<compile_context>
chip_gen: v5e
topology: v5e:2x2
jax: 0.10.0
libtpu: 0.0.40
codegen_flags: <defaults>
</compile_context>

<pallas_src>
import functools
import math

import jax
import jax.numpy as jnp
import numpy as np
from jax.experimental import pallas as pl
from jax.experimental.pallas import tpu as pltpu

LEAKY_SLOPE = 0.05  # nn.LeakyReLU(0.05)


# ------------------------------- fused kernel -------------------------------

def _leaky_relu(y):
    return jnp.where(y > 0, y, LEAKY_SLOPE * y)


def _fused_multitask_kernel(*refs, n_lin, n_heads, compute_dtype):
    """Whole MultitaskMLP forward for one batch row-tile.

    Input-ref order:
      x_dy, x_st, mask_dy, mask_st, S_dy, S_st,
      dy   MLP : n_lin x (w, b)
      st   MLP : n_lin x (w, b)
      fuse MLP : w0_dy, w0_st, b0, then (n_lin - 1) x (w, b)
      heads    : n_heads x n_lin x (w, b)
    Output refs: one (B_tile, task_dim_k) per head.
    """
    in_refs = refs[: len(refs) - n_heads]
    out_refs = refs[len(refs) - n_heads:]

    it = iter(in_refs)
    x_dy_ref = next(it); x_st_ref = next(it)
    m_dy_ref = next(it); m_st_ref = next(it)
    s_dy_ref = next(it); s_st_ref = next(it)

    def take_mlp():
        return [(next(it), next(it)) for _ in range(n_lin)]

    dy_p = take_mlp()
    st_p = take_mlp()
    fuse_w0_dy = next(it); fuse_w0_st = next(it); fuse_b0 = next(it)
    fuse_rest = [(next(it), next(it)) for _ in range(n_lin - 1)]
    head_p = [take_mlp() for _ in range(n_heads)]

    def dot(a, w_ref):
        # MXU matmul; f32 accumulation, f32 epilogue (bias + LeakyReLU stay f32).
        return jnp.dot(a.astype(compute_dtype), w_ref[...].astype(compute_dtype),
                       preferred_element_type=jnp.float32)

    def run_mlp(h, params):
        for i, (w_ref, b_ref) in enumerate(params):
            h = dot(h, w_ref) + b_ref[...]
            if i < len(params) - 1:
                h = _leaky_relu(h)
        return h

    # causal_masking (ref='zero'): x * mask.  The compact (Bt, Np) node mask is
    # broadcast to feature layout in-kernel with one tiny matmul against the
    # constant node->feature selection matrix (no (B, F)-sized mask in HBM).
    m_dy_full = jnp.dot(m_dy_ref[...], s_dy_ref[...], preferred_element_type=jnp.float32)
    m_st_full = jnp.dot(m_st_ref[...], s_st_ref[...], preferred_element_type=jnp.float32)

    h_dy = run_mlp(x_dy_ref[...] * m_dy_full, dy_p)
    h_st = run_mlp(x_st_ref[...] * m_st_full, st_p)

    # fuse MLP: first layer consumes both branch activations directly from VMEM
    # (split weight replaces torch.concat([mlp_out_dy, mlp_out_st], axis=1)).
    h = dot(h_dy, fuse_w0_dy) + dot(h_st, fuse_w0_st) + fuse_b0[...]
    h = _leaky_relu(h)
    h = run_mlp(h, fuse_rest)

    # Task heads: all computed from the shared VMEM-resident fitting_model_out.
    for k in range(n_heads):
        out_refs[k][...] = run_mlp(h, head_p[k]).astype(out_refs[k].dtype)


# ------------------------------ wrapper / call -------------------------------

def _round_up(x, m):
    return (x + m - 1) // m * m


def _pick_row_tile(bp):
    for c in (512, 256, 128, 64, 32, 16, 8):
        if c <= bp and bp % c == 0:
            return c
    return bp


def multitask_mlp_forward(params, x_dy, x_st, mask_dy, mask_st, *,
                          compute_dtype=jnp.float32):
    """ref='zero' path of MultitaskMLP.forward (dropout=0 / eval), fully fused."""
    B, L, N, D = x_dy.shape
    Dst = x_st.shape[-1]
    F_dy = L * N * D
    F_st = N * Dst
    H = params["dy"][-1][0].shape[1]
    task_dims = [p[-1][0].shape[1] for p in params["heads"]]
    n_lin = len(params["dy"])
    n_heads = len(params["heads"])

    # Flatten 'b l n d -> b (l n d)' / 'b n d -> b (n d)'; pad batch rows to a
    # sublane multiple (8) and the node axis of the masks to 8 (zero rows of S
    # make the padding a no-op numerically).
    Bp = max(8, _round_up(B, 8))
    Np = _round_up(N, 8)
    x_dy_f = jnp.pad(x_dy.reshape(B, F_dy).astype(jnp.float32), ((0, Bp - B), (0, 0)))
    x_st_f = jnp.pad(x_st.reshape(B, F_st).astype(jnp.float32), ((0, Bp - B), (0, 0)))
    m_dy = jnp.pad(mask_dy.astype(jnp.float32), ((0, Bp - B), (0, Np - N)))
    m_st = jnp.pad(mask_st.astype(jnp.float32), ((0, Bp - B), (0, Np - N)))

    # Constant node -> flattened-feature selection matrices (built with numpy at
    # trace time; independent of B, tiny).
    node_dy = np.tile(np.repeat(np.arange(N), D), L)     # (F_dy,): col -> node index
    node_st = np.repeat(np.arange(N), Dst)               # (F_st,)
    S_dy = jnp.asarray((node_dy[None, :] == np.arange(Np)[:, None]).astype(np.float32))
    S_st = jnp.asarray((node_st[None, :] == np.arange(Np)[:, None]).astype(np.float32))

    # Split the fuse MLP first-layer weight (2H, H) -> (H, H) + (H, H).
    fuse_w0, fuse_b0 = params["fuse"][0]
    fuse_w0_dy, fuse_w0_st = fuse_w0[:H], fuse_w0[H:]

    flat_inputs = [x_dy_f, x_st_f, m_dy, m_st, S_dy, S_st]
    for w, b in params["dy"]:
        flat_inputs += [w, b]
    for w, b in params["st"]:
        flat_inputs += [w, b]
    flat_inputs += [fuse_w0_dy, fuse_w0_st, fuse_b0]
    for w, b in params["fuse"][1:]:
        flat_inputs += [w, b]
    for head in params["heads"]:
        for w, b in head:
            flat_inputs += [w, b]

    B_TILE = _pick_row_tile(Bp)
    grid = (Bp // B_TILE,)

    in_specs = []
    for idx, arr in enumerate(flat_inputs):
        if idx < 4:  # x_dy, x_st, mask_dy, mask_st: tiled over batch rows
            in_specs.append(pl.BlockSpec((B_TILE, arr.shape[1]), lambda i: (i, 0)))
        else:        # selection matrices / weights / biases: grid-resident
            in_specs.append(pl.BlockSpec(arr.shape, lambda i: (0, 0)))

    out_shapes = tuple(jax.ShapeDtypeStruct((Bp, td), jnp.float32) for td in task_dims)
    out_specs = tuple(pl.BlockSpec((B_TILE, td), lambda i: (i, 0)) for td in task_dims)

    kernel = functools.partial(_fused_multitask_kernel, n_lin=n_lin,
                               n_heads=n_heads, compute_dtype=compute_dtype)

    # TODO(synk): for production hid_dim (e.g. 4096) on v7x (64 MiB VMEM), the
    # weight-resident specs above must become K/N-tiled BlockSpecs with an f32
    # accumulator scratch, an "arbitrary" reduction grid axis and an explicit
    # pltpu.CompilerParams(vmem_limit_bytes=...); toy dims fit comfortably.
    outs = pl.pallas_call(
        kernel,
        out_shape=out_shapes,
        grid=grid,
        in_specs=in_specs,
        out_specs=out_specs,
        compiler_params=pltpu.CompilerParams(dimension_semantics=("parallel",)),
    )(*flat_inputs)
    return [o[:B] for o in outs]


# ------------------------------ param plumbing -------------------------------

def init_mlp_params(key, in_dim, n_hid, out_dim, n_layer):
    """Matches MLP.__init__: n_layer (Linear+LeakyReLU) blocks, then final Linear.
    Weights: xavier_uniform_ (MLP.init_weights); biases: PyTorch Linear default."""
    dims = [(in_dim, n_hid)] + [(n_hid, n_hid)] * (n_layer - 1) + [(n_hid, out_dim)]
    params = []
    for (di, do) in dims:
        key, kw, kb = jax.random.split(key, 3)
        limit = math.sqrt(6.0 / (di + do))
        w = jax.random.uniform(kw, (di, do), jnp.float32, -limit, limit)
        bound = 1.0 / math.sqrt(di)
        b = jax.random.uniform(kb, (1, do), jnp.float32, -bound, bound)
        params.append((w, b))
    return params, key


def init_multitask_mlp(key, dynamic_dim, static_dim, hid_dim, task_dims, mlp_layers):
    params = {}
    params["dy"], key = init_mlp_params(key, dynamic_dim, hid_dim, hid_dim, mlp_layers)
    params["st"], key = init_mlp_params(key, static_dim, hid_dim, hid_dim, mlp_layers)
    params["fuse"], key = init_mlp_params(key, hid_dim * 2, hid_dim, hid_dim, mlp_layers)
    params["heads"] = []
    for out_dim in task_dims:
        p, key = init_mlp_params(key, hid_dim, hid_dim, out_dim, mlp_layers)
        params["heads"].append(p)
    return params


# ----------------------------- pure-JAX reference ----------------------------

def _ref_mlp(params, x, mask=None):
    h = x if mask is None else x * mask
    for i, (w, b) in enumerate(params):
        h = h @ w + b
        if i < len(params) - 1:
            h = jnp.where(h > 0, h, LEAKY_SLOPE * h)
    return h


def _ref_forward(params, x_dy, x_st, mask_dy, mask_st):
    B, L, N, D = x_dy.shape
    Dst = x_st.shape[-1]
    mdy = jnp.broadcast_to(mask_dy[:, None, :, None], x_dy.shape).reshape(B, L * N * D)
    mst = jnp.broadcast_to(mask_st[:, :, None], x_st.shape).reshape(B, N * Dst)
    o_dy = _ref_mlp(params["dy"], x_dy.reshape(B, -1), mdy)
    o_st = _ref_mlp(params["st"], x_st.reshape(B, -1), mst)
    fit = _ref_mlp(params["fuse"], jnp.concatenate([o_dy, o_st], axis=1))
    return [_ref_mlp(p, fit) for p in params["heads"]]


# ----------------------------------- main ------------------------------------

if __name__ == "__main__":
    # Small shapes consistent with the module's forward.
    B, L, N, D = 2, 4, 3, 2          # x_dy: (B, L, N, D), x_st: (B, N, D)
    dynamic_dim = L * N * D          # 24
    static_dim = N * D               # 6
    hid_dim = 32
    mlp_layers = 2
    task_dims = [3, 5]

    key = jax.random.PRNGKey(0)
    k_p, k_dy, k_st, k_mdy, k_mst = jax.random.split(key, 5)

    params = init_multitask_mlp(k_p, dynamic_dim, static_dim, hid_dim, task_dims, mlp_layers)

    x_dy = jax.random.normal(k_dy, (B, L, N, D), jnp.float32)
    x_st = jax.random.normal(k_st, (B, N, D), jnp.float32)
    mask_dy = (jax.random.uniform(k_mdy, (B, N)) > 0.3).astype(jnp.float32)
    mask_st = (jax.random.uniform(k_mst, (B, N)) > 0.3).astype(jnp.float32)

    outs = multitask_mlp_forward(params, x_dy, x_st, mask_dy, mask_st)
    outs = [jax.block_until_ready(o) for o in outs]

    refs = _ref_forward(params, x_dy, x_st, mask_dy, mask_st)
    for o, r, td in zip(outs, refs, task_dims):
        assert o.shape == (B, td), (o.shape, td)
        assert jnp.allclose(o, r, atol=1e-4, rtol=1e-4), "mismatch vs JAX reference"

    print("KERNEL_OK")
</pallas_src>

<mosaic_0001>
module attributes {stable_mosaic.version = 11 : i64} {
  func.func @_fused_multitask_kernel(%arg0: i32, %arg1: memref<8x24xf32, #tpu.memory_space<vmem>>, %arg2: memref<8x6xf32, #tpu.memory_space<vmem>>, %arg3: memref<8x8xf32, #tpu.memory_space<vmem>>, %arg4: memref<8x8xf32, #tpu.memory_space<vmem>>, %arg5: memref<8x24xf32, #tpu.memory_space<vmem>>, %arg6: memref<8x6xf32, #tpu.memory_space<vmem>>, %arg7: memref<24x32xf32, #tpu.memory_space<vmem>>, %arg8: memref<1x32xf32, #tpu.memory_space<vmem>>, %arg9: memref<32x32xf32, #tpu.memory_space<vmem>>, %arg10: memref<1x32xf32, #tpu.memory_space<vmem>>, %arg11: memref<32x32xf32, #tpu.memory_space<vmem>>, %arg12: memref<1x32xf32, #tpu.memory_space<vmem>>, %arg13: memref<6x32xf32, #tpu.memory_space<vmem>>, %arg14: memref<1x32xf32, #tpu.memory_space<vmem>>, %arg15: memref<32x32xf32, #tpu.memory_space<vmem>>, %arg16: memref<1x32xf32, #tpu.memory_space<vmem>>, %arg17: memref<32x32xf32, #tpu.memory_space<vmem>>, %arg18: memref<1x32xf32, #tpu.memory_space<vmem>>, %arg19: memref<32x32xf32, #tpu.memory_space<vmem>>, %arg20: memref<32x32xf32, #tpu.memory_space<vmem>>, %arg21: memref<1x32xf32, #tpu.memory_space<vmem>>, %arg22: memref<32x32xf32, #tpu.memory_space<vmem>>, %arg23: memref<1x32xf32, #tpu.memory_space<vmem>>, %arg24: memref<32x32xf32, #tpu.memory_space<vmem>>, %arg25: memref<1x32xf32, #tpu.memory_space<vmem>>, %arg26: memref<32x32xf32, #tpu.memory_space<vmem>>, %arg27: memref<1x32xf32, #tpu.memory_space<vmem>>, %arg28: memref<32x32xf32, #tpu.memory_space<vmem>>, %arg29: memref<1x32xf32, #tpu.memory_space<vmem>>, %arg30: memref<32x3xf32, #tpu.memory_space<vmem>>, %arg31: memref<1x3xf32, #tpu.memory_space<vmem>>, %arg32: memref<32x32xf32, #tpu.memory_space<vmem>>, %arg33: memref<1x32xf32, #tpu.memory_space<vmem>>, %arg34: memref<32x32xf32, #tpu.memory_space<vmem>>, %arg35: memref<1x32xf32, #tpu.memory_space<vmem>>, %arg36: memref<32x5xf32, #tpu.memory_space<vmem>>, %arg37: memref<1x5xf32, #tpu.memory_space<vmem>>, %arg38: memref<8x3xf32, #tpu.memory_space<vmem>>, %arg39: memref<8x5xf32, #tpu.memory_space<vmem>>) attributes {dimension_semantics = [#tpu.dimension_semantics<parallel>], iteration_bounds = array<i64: 1>, scalar_prefetch = 0 : i64, scratch_operands = 0 : i64, tpu.core_type = #tpu.core_type<tc>, window_params = [{transform_indices = @transform_0, window_bounds = array<i64: 8, 24>}, {transform_indices = @transform_1, window_bounds = array<i64: 8, 6>}, {transform_indices = @transform_2, window_bounds = array<i64: 8, 8>}, {transform_indices = @transform_3, window_bounds = array<i64: 8, 8>}, {pipeline_mode = #tpu.pipeline_mode<synchronous>, transform_indices = @transform_4, window_bounds = array<i64: 8, 24>}, {pipeline_mode = #tpu.pipeline_mode<synchronous>, transform_indices = @transform_5, window_bounds = array<i64: 8, 6>}, {pipeline_mode = #tpu.pipeline_mode<synchronous>, transform_indices = @transform_6, window_bounds = array<i64: 24, 32>}, {pipeline_mode = #tpu.pipeline_mode<synchronous>, transform_indices = @transform_7, window_bounds = array<i64: 1, 32>}, {pipeline_mode = #tpu.pipeline_mode<synchronous>, transform_indices = @transform_8, window_bounds = array<i64: 32, 32>}, {pipeline_mode = #tpu.pipeline_mode<synchronous>, transform_indices = @transform_9, window_bounds = array<i64: 1, 32>}, {pipeline_mode = #tpu.pipeline_mode<synchronous>, transform_indices = @transform_10, window_bounds = array<i64: 32, 32>}, {pipeline_mode = #tpu.pipeline_mode<synchronous>, transform_indices = @transform_11, window_bounds = array<i64: 1, 32>}, {pipeline_mode = #tpu.pipeline_mode<synchronous>, transform_indices = @transform_12, window_bounds = array<i64: 6, 32>}, {pipeline_mode = #tpu.pipeline_mode<synchronous>, transform_indices = @transform_13, window_bounds = array<i64: 1, 32>}, {pipeline_mode = #tpu.pipeline_mode<synchronous>, transform_indices = @transform_14, window_bounds = array<i64: 32, 32>}, {pipeline_mode = #tpu.pipeline_mode<synchronous>, transform_indices = @transform_15, window_bounds = array<i64: 1, 32>}, {pipeline_mode = #tpu.pipeline_mode<synchronous>, transform_indices = @transform_16, window_bounds = array<i64: 32, 32>}, {pipeline_mode = #tpu.pipeline_mode<synchronous>, transform_indices = @transform_17, window_bounds = array<i64: 1, 32>}, {pipeline_mode = #tpu.pipeline_mode<synchronous>, transform_indices = @transform_18, window_bounds = array<i64: 32, 32>}, {pipeline_mode = #tpu.pipeline_mode<synchronous>, transform_indices = @transform_19, window_bounds = array<i64: 32, 32>}, {pipeline_mode = #tpu.pipeline_mode<synchronous>, transform_indices = @transform_20, window_bounds = array<i64: 1, 32>}, {pipeline_mode = #tpu.pipeline_mode<synchronous>, transform_indices = @transform_21, window_bounds = array<i64: 32, 32>}, {pipeline_mode = #tpu.pipeline_mode<synchronous>, transform_indices = @transform_22, window_bounds = array<i64: 1, 32>}, {pipeline_mode = #tpu.pipeline_mode<synchronous>, transform_indices = @transform_23, window_bounds = array<i64: 32, 32>}, {pipeline_mode = #tpu.pipeline_mode<synchronous>, transform_indices = @transform_24, window_bounds = array<i64: 1, 32>}, {pipeline_mode = #tpu.pipeline_mode<synchronous>, transform_indices = @transform_25, window_bounds = array<i64: 32, 32>}, {pipeline_mode = #tpu.pipeline_mode<synchronous>, transform_indices = @transform_26, window_bounds = array<i64: 1, 32>}, {pipeline_mode = #tpu.pipeline_mode<synchronous>, transform_indices = @transform_27, window_bounds = array<i64: 32, 32>}, {pipeline_mode = #tpu.pipeline_mode<synchronous>, transform_indices = @transform_28, window_bounds = array<i64: 1, 32>}, {pipeline_mode = #tpu.pipeline_mode<synchronous>, transform_indices = @transform_29, window_bounds = array<i64: 32, 3>}, {pipeline_mode = #tpu.pipeline_mode<synchronous>, transform_indices = @transform_30, window_bounds = array<i64: 1, 3>}, {pipeline_mode = #tpu.pipeline_mode<synchronous>, transform_indices = @transform_31, window_bounds = array<i64: 32, 32>}, {pipeline_mode = #tpu.pipeline_mode<synchronous>, transform_indices = @transform_32, window_bounds = array<i64: 1, 32>}, {pipeline_mode = #tpu.pipeline_mode<synchronous>, transform_indices = @transform_33, window_bounds = array<i64: 32, 32>}, {pipeline_mode = #tpu.pipeline_mode<synchronous>, transform_indices = @transform_34, window_bounds = array<i64: 1, 32>}, {pipeline_mode = #tpu.pipeline_mode<synchronous>, transform_indices = @transform_35, window_bounds = array<i64: 32, 5>}, {pipeline_mode = #tpu.pipeline_mode<synchronous>, transform_indices = @transform_36, window_bounds = array<i64: 1, 5>}, {transform_indices = @transform_37, window_bounds = array<i64: 8, 3>}, {transform_indices = @transform_38, window_bounds = array<i64: 8, 5>}]} {
    %c0 = arith.constant 0 : index
    %c0_0 = arith.constant 0 : index
    %0 = vector.load %arg3[%c0, %c0_0] : memref<8x8xf32, #tpu.memory_space<vmem>>, vector<8x8xf32>
    %c0_1 = arith.constant 0 : index
    %c0_2 = arith.constant 0 : index
    %1 = vector.load %arg5[%c0_1, %c0_2] : memref<8x24xf32, #tpu.memory_space<vmem>>, vector<8x24xf32>
    %cst = arith.constant dense<0.000000e+00> : vector<8x24xf32>
    %2 = tpu.matmul %0, %1, %cst {dimension_numbers = #tpu.dot_dimension_numbers<[1], [0], [0], [1], [0, 0, 1, 1], [], []>} : vector<8x8xf32>, vector<8x24xf32>, vector<8x24xf32> -> vector<8x24xf32>
    %c0_3 = arith.constant 0 : index
    %c0_4 = arith.constant 0 : index
    %3 = vector.load %arg4[%c0_3, %c0_4] : memref<8x8xf32, #tpu.memory_space<vmem>>, vector<8x8xf32>
    %c0_5 = arith.constant 0 : index
    %c0_6 = arith.constant 0 : index
    %4 = vector.load %arg6[%c0_5, %c0_6] : memref<8x6xf32, #tpu.memory_space<vmem>>, vector<8x6xf32>
    %cst_7 = arith.constant dense<0.000000e+00> : vector<8x6xf32>
    %5 = tpu.matmul %3, %4, %cst_7 {dimension_numbers = #tpu.dot_dimension_numbers<[1], [0], [0], [1], [0, 0, 1, 1], [], []>} : vector<8x8xf32>, vector<8x6xf32>, vector<8x6xf32> -> vector<8x6xf32>
    %c0_8 = arith.constant 0 : index
    %c0_9 = arith.constant 0 : index
    %6 = vector.load %arg1[%c0_8, %c0_9] : memref<8x24xf32, #tpu.memory_space<vmem>>, vector<8x24xf32>
    %7 = arith.mulf %6, %2 : vector<8x24xf32>
    %c0_10 = arith.constant 0 : index
    %c0_11 = arith.constant 0 : index
    %8 = vector.load %arg7[%c0_10, %c0_11] : memref<24x32xf32, #tpu.memory_space<vmem>>, vector<24x32xf32>
    %cst_12 = arith.constant dense<0.000000e+00> : vector<8x32xf32>
    %9 = tpu.matmul %7, %8, %cst_12 {dimension_numbers = #tpu.dot_dimension_numbers<[1], [0], [0], [1], [0, 0, 1, 1], [], []>} : vector<8x24xf32>, vector<24x32xf32>, vector<8x32xf32> -> vector<8x32xf32>
    %c0_13 = arith.constant 0 : index
    %c0_14 = arith.constant 0 : index
    %10 = vector.load %arg8[%c0_13, %c0_14] : memref<1x32xf32, #tpu.memory_space<vmem>>, vector<1x32xf32>
    %11 = vector.broadcast %10 : vector<1x32xf32> to vector<8x32xf32>
    %12 = arith.addf %9, %11 : vector<8x32xf32>
    %cst_15 = arith.constant 0.000000e+00 : f32
    %13 = vector.broadcast %cst_15 : f32 to vector<8x32xf32>
    %14 = arith.cmpf ogt, %12, %13 : vector<8x32xf32>
    %cst_16 = arith.constant 5.000000e-02 : f32
    %15 = vector.broadcast %cst_16 : f32 to vector<8x32xf32>
    %16 = arith.mulf %15, %12 : vector<8x32xf32>
    %17 = arith.select %14, %12, %16 : vector<8x32xi1>, vector<8x32xf32>
    %c0_17 = arith.constant 0 : index
    %c0_18 = arith.constant 0 : index
    %18 = vector.load %arg9[%c0_17, %c0_18] : memref<32x32xf32, #tpu.memory_space<vmem>>, vector<32x32xf32>
    %cst_19 = arith.constant dense<0.000000e+00> : vector<8x32xf32>
    %19 = tpu.matmul %17, %18, %cst_19 {dimension_numbers = #tpu.dot_dimension_numbers<[1], [0], [0], [1], [0, 0, 1, 1], [], []>} : vector<8x32xf32>, vector<32x32xf32>, vector<8x32xf32> -> vector<8x32xf32>
    %c0_20 = arith.constant 0 : index
    %c0_21 = arith.constant 0 : index
    %20 = vector.load %arg10[%c0_20, %c0_21] : memref<1x32xf32, #tpu.memory_space<vmem>>, vector<1x32xf32>
    %21 = vector.broadcast %20 : vector<1x32xf32> to vector<8x32xf32>
    %22 = arith.addf %19, %21 : vector<8x32xf32>
    %cst_22 = arith.constant 0.000000e+00 : f32
    %23 = vector.broadcast %cst_22 : f32 to vector<8x32xf32>
    %24 = arith.cmpf ogt, %22, %23 : vector<8x32xf32>
    %cst_23 = arith.constant 5.000000e-02 : f32
    %25 = vector.broadcast %cst_23 : f32 to vector<8x32xf32>
    %26 = arith.mulf %25, %22 : vector<8x32xf32>
    %27 = arith.select %24, %22, %26 : vector<8x32xi1>, vector<8x32xf32>
    %c0_24 = arith.constant 0 : index
    %c0_25 = arith.constant 0 : index
    %28 = vector.load %arg11[%c0_24, %c0_25] : memref<32x32xf32, #tpu.memory_space<vmem>>, vector<32x32xf32>
    %cst_26 = arith.constant dense<0.000000e+00> : vector<8x32xf32>
    %29 = tpu.matmul %27, %28, %cst_26 {dimension_numbers = #tpu.dot_dimension_numbers<[1], [0], [0], [1], [0, 0, 1, 1], [], []>} : vector<8x32xf32>, vector<32x32xf32>, vector<8x32xf32> -> vector<8x32xf32>
    %c0_27 = arith.constant 0 : index
    %c0_28 = arith.constant 0 : index
    %30 = vector.load %arg12[%c0_27, %c0_28] : memref<1x32xf32, #tpu.memory_space<vmem>>, vector<1x32xf32>
    %31 = vector.broadcast %30 : vector<1x32xf32> to vector<8x32xf32>
    %32 = arith.addf %29, %31 : vector<8x32xf32>
    %c0_29 = arith.constant 0 : index
    %c0_30 = arith.constant 0 : index
    %33 = vector.load %arg2[%c0_29, %c0_30] : memref<8x6xf32, #tpu.memory_space<vmem>>, vector<8x6xf32>
    %34 = arith.mulf %33, %5 : vector<8x6xf32>
    %c0_31 = arith.constant 0 : index
    %c0_32 = arith.constant 0 : index
    %35 = vector.load %arg13[%c0_31, %c0_32] : memref<6x32xf32, #tpu.memory_space<vmem>>, vector<6x32xf32>
    %cst_33 = arith.constant dense<0.000000e+00> : vector<8x32xf32>
    %36 = tpu.matmul %34, %35, %cst_33 {dimension_numbers = #tpu.dot_dimension_numbers<[1], [0], [0], [1], [0, 0, 1, 1], [], []>} : vector<8x6xf32>, vector<6x32xf32>, vector<8x32xf32> -> vector<8x32xf32>
    %c0_34 = arith.constant 0 : index
    %c0_35 = arith.constant 0 : index
    %37 = vector.load %arg14[%c0_34, %c0_35] : memref<1x32xf32, #tpu.memory_space<vmem>>, vector<1x32xf32>
    %38 = vector.broadcast %37 : vector<1x32xf32> to vector<8x32xf32>
    %39 = arith.addf %36, %38 : vector<8x32xf32>
    %cst_36 = arith.constant 0.000000e+00 : f32
    %40 = vector.broadcast %cst_36 : f32 to vector<8x32xf32>
    %41 = arith.cmpf ogt, %39, %40 : vector<8x32xf32>
    %cst_37 = arith.constant 5.000000e-02 : f32
    %42 = vector.broadcast %cst_37 : f32 to vector<8x32xf32>
    %43 = arith.mulf %42, %39 : vector<8x32xf32>
    %44 = arith.select %41, %39, %43 : vector<8x32xi1>, vector<8x32xf32>
    %c0_38 = arith.constant 0 : index
    %c0_39 = arith.constant 0 : index
    %45 = vector.load %arg15[%c0_38, %c0_39] : memref<32x32xf32, #tpu.memory_space<vmem>>, vector<32x32xf32>
    %cst_40 = arith.constant dense<0.000000e+00> : vector<8x32xf32>
    %46 = tpu.matmul %44, %45, %cst_40 {dimension_numbers = #tpu.dot_dimension_numbers<[1], [0], [0], [1], [0, 0, 1, 1], [], []>} : vector<8x32xf32>, vector<32x32xf32>, vector<8x32xf32> -> vector<8x32xf32>
    %c0_41 = arith.constant 0 : index
    %c0_42 = arith.constant 0 : index
    %47 = vector.load %arg16[%c0_41, %c0_42] : memref<1x32xf32, #tpu.memory_space<vmem>>, vector<1x32xf32>
    %48 = vector.broadcast %47 : vector<1x32xf32> to vector<8x32xf32>
    %49 = arith.addf %46, %48 : vector<8x32xf32>
    %cst_43 = arith.constant 0.000000e+00 : f32
    %50 = vector.broadcast %cst_43 : f32 to vector<8x32xf32>
    %51 = arith.cmpf ogt, %49, %50 : vector<8x32xf32>
    %cst_44 = arith.constant 5.000000e-02 : f32
    %52 = vector.broadcast %cst_44 : f32 to vector<8x32xf32>
    %53 = arith.mulf %52, %49 : vector<8x32xf32>
    %54 = arith.select %51, %49, %53 : vector<8x32xi1>, vector<8x32xf32>
    %c0_45 = arith.constant 0 : index
    %c0_46 = arith.constant 0 : index
    %55 = vector.load %arg17[%c0_45, %c0_46] : memref<32x32xf32, #tpu.memory_space<vmem>>, vector<32x32xf32>
    %cst_47 = arith.constant dense<0.000000e+00> : vector<8x32xf32>
    %56 = tpu.matmul %54, %55, %cst_47 {dimension_numbers = #tpu.dot_dimension_numbers<[1], [0], [0], [1], [0, 0, 1, 1], [], []>} : vector<8x32xf32>, vector<32x32xf32>, vector<8x32xf32> -> vector<8x32xf32>
    %c0_48 = arith.constant 0 : index
    %c0_49 = arith.constant 0 : index
    %57 = vector.load %arg18[%c0_48, %c0_49] : memref<1x32xf32, #tpu.memory_space<vmem>>, vector<1x32xf32>
    %58 = vector.broadcast %57 : vector<1x32xf32> to vector<8x32xf32>
    %59 = arith.addf %56, %58 : vector<8x32xf32>
    %c0_50 = arith.constant 0 : index
    %c0_51 = arith.constant 0 : index
    %60 = vector.load %arg19[%c0_50, %c0_51] : memref<32x32xf32, #tpu.memory_space<vmem>>, vector<32x32xf32>
    %cst_52 = arith.constant dense<0.000000e+00> : vector<8x32xf32>
    %61 = tpu.matmul %32, %60, %cst_52 {dimension_numbers = #tpu.dot_dimension_numbers<[1], [0], [0], [1], [0, 0, 1, 1], [], []>} : vector<8x32xf32>, vector<32x32xf32>, vector<8x32xf32> -> vector<8x32xf32>
    %c0_53 = arith.constant 0 : index
    %c0_54 = arith.constant 0 : index
    %62 = vector.load %arg20[%c0_53, %c0_54] : memref<32x32xf32, #tpu.memory_space<vmem>>, vector<32x32xf32>
    %cst_55 = arith.constant dense<0.000000e+00> : vector<8x32xf32>
    %63 = tpu.matmul %59, %62, %cst_55 {dimension_numbers = #tpu.dot_dimension_numbers<[1], [0], [0], [1], [0, 0, 1, 1], [], []>} : vector<8x32xf32>, vector<32x32xf32>, vector<8x32xf32> -> vector<8x32xf32>
    %64 = arith.addf %61, %63 : vector<8x32xf32>
    %c0_56 = arith.constant 0 : index
    %c0_57 = arith.constant 0 : index
    %65 = vector.load %arg21[%c0_56, %c0_57] : memref<1x32xf32, #tpu.memory_space<vmem>>, vector<1x32xf32>
    %66 = vector.broadcast %65 : vector<1x32xf32> to vector<8x32xf32>
    %67 = arith.addf %64, %66 : vector<8x32xf32>
    %cst_58 = arith.constant 0.000000e+00 : f32
    %68 = vector.broadcast %cst_58 : f32 to vector<8x32xf32>
    %69 = arith.cmpf ogt, %67, %68 : vector<8x32xf32>
    %cst_59 = arith.constant 5.000000e-02 : f32
    %70 = vector.broadcast %cst_59 : f32 to vector<8x32xf32>
    %71 = arith.mulf %70, %67 : vector<8x32xf32>
    %72 = arith.select %69, %67, %71 : vector<8x32xi1>, vector<8x32xf32>
    %c0_60 = arith.constant 0 : index
    %c0_61 = arith.constant 0 : index
    %73 = vector.load %arg22[%c0_60, %c0_61] : memref<32x32xf32, #tpu.memory_space<vmem>>, vector<32x32xf32>
    %cst_62 = arith.constant dense<0.000000e+00> : vector<8x32xf32>
    %74 = tpu.matmul %72, %73, %cst_62 {dimension_numbers = #tpu.dot_dimension_numbers<[1], [0], [0], [1], [0, 0, 1, 1], [], []>} : vector<8x32xf32>, vector<32x32xf32>, vector<8x32xf32> -> vector<8x32xf32>
    %c0_63 = arith.constant 0 : index
    %c0_64 = arith.constant 0 : index
    %75 = vector.load %arg23[%c0_63, %c0_64] : memref<1x32xf32, #tpu.memory_space<vmem>>, vector<1x32xf32>
    %76 = vector.broadcast %75 : vector<1x32xf32> to vector<8x32xf32>
    %77 = arith.addf %74, %76 : vector<8x32xf32>
    %cst_65 = arith.constant 0.000000e+00 : f32
    %78 = vector.broadcast %cst_65 : f32 to vector<8x32xf32>
    %79 = arith.cmpf ogt, %77, %78 : vector<8x32xf32>
    %cst_66 = arith.constant 5.000000e-02 : f32
    %80 = vector.broadcast %cst_66 : f32 to vector<8x32xf32>
    %81 = arith.mulf %80, %77 : vector<8x32xf32>
    %82 = arith.select %79, %77, %81 : vector<8x32xi1>, vector<8x32xf32>
    %c0_67 = arith.constant 0 : index
    %c0_68 = arith.constant 0 : index
    %83 = vector.load %arg24[%c0_67, %c0_68] : memref<32x32xf32, #tpu.memory_space<vmem>>, vector<32x32xf32>
    %cst_69 = arith.constant dense<0.000000e+00> : vector<8x32xf32>
    %84 = tpu.matmul %82, %83, %cst_69 {dimension_numbers = #tpu.dot_dimension_numbers<[1], [0], [0], [1], [0, 0, 1, 1], [], []>} : vector<8x32xf32>, vector<32x32xf32>, vector<8x32xf32> -> vector<8x32xf32>
    %c0_70 = arith.constant 0 : index
    %c0_71 = arith.constant 0 : index
    %85 = vector.load %arg25[%c0_70, %c0_71] : memref<1x32xf32, #tpu.memory_space<vmem>>, vector<1x32xf32>
    %86 = vector.broadcast %85 : vector<1x32xf32> to vector<8x32xf32>
    %87 = arith.addf %84, %86 : vector<8x32xf32>
    %c0_72 = arith.constant 0 : index
    %c0_73 = arith.constant 0 : index
    %88 = vector.load %arg26[%c0_72, %c0_73] : memref<32x32xf32, #tpu.memory_space<vmem>>, vector<32x32xf32>
    %cst_74 = arith.constant dense<0.000000e+00> : vector<8x32xf32>
    %89 = tpu.matmul %87, %88, %cst_74 {dimension_numbers = #tpu.dot_dimension_numbers<[1], [0], [0], [1], [0, 0, 1, 1], [], []>} : vector<8x32xf32>, vector<32x32xf32>, vector<8x32xf32> -> vector<8x32xf32>
    %c0_75 = arith.constant 0 : index
    %c0_76 = arith.constant 0 : index
    %90 = vector.load %arg27[%c0_75, %c0_76] : memref<1x32xf32, #tpu.memory_space<vmem>>, vector<1x32xf32>
    %91 = vector.broadcast %90 : vector<1x32xf32> to vector<8x32xf32>
    %92 = arith.addf %89, %91 : vector<8x32xf32>
    %cst_77 = arith.constant 0.000000e+00 : f32
    %93 = vector.broadcast %cst_77 : f32 to vector<8x32xf32>
    %94 = arith.cmpf ogt, %92, %93 : vector<8x32xf32>
    %cst_78 = arith.constant 5.000000e-02 : f32
    %95 = vector.broadcast %cst_78 : f32 to vector<8x32xf32>
    %96 = arith.mulf %95, %92 : vector<8x32xf32>
    %97 = arith.select %94, %92, %96 : vector<8x32xi1>, vector<8x32xf32>
    %c0_79 = arith.constant 0 : index
    %c0_80 = arith.constant 0 : index
    %98 = vector.load %arg28[%c0_79, %c0_80] : memref<32x32xf32, #tpu.memory_space<vmem>>, vector<32x32xf32>
    %cst_81 = arith.constant dense<0.000000e+00> : vector<8x32xf32>
    %99 = tpu.matmul %97, %98, %cst_81 {dimension_numbers = #tpu.dot_dimension_numbers<[1], [0], [0], [1], [0, 0, 1, 1], [], []>} : vector<8x32xf32>, vector<32x32xf32>, vector<8x32xf32> -> vector<8x32xf32>
    %c0_82 = arith.constant 0 : index
    %c0_83 = arith.constant 0 : index
    %100 = vector.load %arg29[%c0_82, %c0_83] : memref<1x32xf32, #tpu.memory_space<vmem>>, vector<1x32xf32>
    %101 = vector.broadcast %100 : vector<1x32xf32> to vector<8x32xf32>
    %102 = arith.addf %99, %101 : vector<8x32xf32>
    %cst_84 = arith.constant 0.000000e+00 : f32
    %103 = vector.broadcast %cst_84 : f32 to vector<8x32xf32>
    %104 = arith.cmpf ogt, %102, %103 : vector<8x32xf32>
    %cst_85 = arith.constant 5.000000e-02 : f32
    %105 = vector.broadcast %cst_85 : f32 to vector<8x32xf32>
    %106 = arith.mulf %105, %102 : vector<8x32xf32>
    %107 = arith.select %104, %102, %106 : vector<8x32xi1>, vector<8x32xf32>
    %c0_86 = arith.constant 0 : index
    %c0_87 = arith.constant 0 : index
    %108 = vector.load %arg30[%c0_86, %c0_87] : memref<32x3xf32, #tpu.memory_space<vmem>>, vector<32x3xf32>
    %cst_88 = arith.constant dense<0.000000e+00> : vector<8x3xf32>
    %109 = tpu.matmul %107, %108, %cst_88 {dimension_numbers = #tpu.dot_dimension_numbers<[1], [0], [0], [1], [0, 0, 1, 1], [], []>} : vector<8x32xf32>, vector<32x3xf32>, vector<8x3xf32> -> vector<8x3xf32>
    %c0_89 = arith.constant 0 : index
    %c0_90 = arith.constant 0 : index
    %110 = vector.load %arg31[%c0_89, %c0_90] : memref<1x3xf32, #tpu.memory_space<vmem>>, vector<1x3xf32>
    %111 = vector.broadcast %110 : vector<1x3xf32> to vector<8x3xf32>
    %112 = arith.addf %109, %111 : vector<8x3xf32>
    %c0_91 = arith.constant 0 : index
    %c0_92 = arith.constant 0 : index
    %113 = vector.load %arg38[%c0_91, %c0_92] : memref<8x3xf32, #tpu.memory_space<vmem>>, vector<8x3xf32>
    tpu.vector_store %arg38[%c0_91, %c0_92], %112 {strides = array<i32>} : memref<8x3xf32, #tpu.memory_space<vmem>>, vector<8x3xf32>,
    %c0_93 = arith.constant 0 : index
    %c0_94 = arith.constant 0 : index
    %114 = vector.load %arg32[%c0_93, %c0_94] : memref<32x32xf32, #tpu.memory_space<vmem>>, vector<32x32xf32>
    %cst_95 = arith.constant dense<0.000000e+00> : vector<8x32xf32>
    %115 = tpu.matmul %87, %114, %cst_95 {dimension_numbers = #tpu.dot_dimension_numbers<[1], [0], [0], [1], [0, 0, 1, 1], [], []>} : vector<8x32xf32>, vector<32x32xf32>, vector<8x32xf32> -> vector<8x32xf32>
    %c0_96 = arith.constant 0 : index
    %c0_97 = arith.constant 0 : index
    %116 = vector.load %arg33[%c0_96, %c0_97] : memref<1x32xf32, #tpu.memory_space<vmem>>, vector<1x32xf32>
    %117 = vector.broadcast %116 : vector<1x32xf32> to vector<8x32xf32>
    %118 = arith.addf %115, %117 : vector<8x32xf32>
    %cst_98 = arith.constant 0.000000e+00 : f32
    %119 = vector.broadcast %cst_98 : f32 to vector<8x32xf32>
    %120 = arith.cmpf ogt, %118, %119 : vector<8x32xf32>
    %cst_99 = arith.constant 5.000000e-02 : f32
    %121 = vector.broadcast %cst_99 : f32 to vector<8x32xf32>
    %122 = arith.mulf %121, %118 : vector<8x32xf32>
    %123 = arith.select %120, %118, %122 : vector<8x32xi1>, vector<8x32xf32>
    %c0_100 = arith.constant 0 : index
    %c0_101 = arith.constant 0 : index
    %124 = vector.load %arg34[%c0_100, %c0_101] : memref<32x32xf32, #tpu.memory_space<vmem>>, vector<32x32xf32>
    %cst_102 = arith.constant dense<0.000000e+00> : vector<8x32xf32>
    %125 = tpu.matmul %123, %124, %cst_102 {dimension_numbers = #tpu.dot_dimension_numbers<[1], [0], [0], [1], [0, 0, 1, 1], [], []>} : vector<8x32xf32>, vector<32x32xf32>, vector<8x32xf32> -> vector<8x32xf32>
    %c0_103 = arith.constant 0 : index
    %c0_104 = arith.constant 0 : index
    %126 = vector.load %arg35[%c0_103, %c0_104] : memref<1x32xf32, #tpu.memory_space<vmem>>, vector<1x32xf32>
    %127 = vector.broadcast %126 : vector<1x32xf32> to vector<8x32xf32>
    %128 = arith.addf %125, %127 : vector<8x32xf32>
    %cst_105 = arith.constant 0.000000e+00 : f32
    %129 = vector.broadcast %cst_105 : f32 to vector<8x32xf32>
    %130 = arith.cmpf ogt, %128, %129 : vector<8x32xf32>
    %cst_106 = arith.constant 5.000000e-02 : f32
    %131 = vector.broadcast %cst_106 : f32 to vector<8x32xf32>
    %132 = arith.mulf %131, %128 : vector<8x32xf32>
    %133 = arith.select %130, %128, %132 : vector<8x32xi1>, vector<8x32xf32>
    %c0_107 = arith.constant 0 : index
    %c0_108 = arith.constant 0 : index
    %134 = vector.load %arg36[%c0_107, %c0_108] : memref<32x5xf32, #tpu.memory_space<vmem>>, vector<32x5xf32>
    %cst_109 = arith.constant dense<0.000000e+00> : vector<8x5xf32>
    %135 = tpu.matmul %133, %134, %cst_109 {dimension_numbers = #tpu.dot_dimension_numbers<[1], [0], [0], [1], [0, 0, 1, 1], [], []>} : vector<8x32xf32>, vector<32x5xf32>, vector<8x5xf32> -> vector<8x5xf32>
    %c0_110 = arith.constant 0 : index
    %c0_111 = arith.constant 0 : index
    %136 = vector.load %arg37[%c0_110, %c0_111] : memref<1x5xf32, #tpu.memory_space<vmem>>, vector<1x5xf32>
    %137 = vector.broadcast %136 : vector<1x5xf32> to vector<8x5xf32>
    %138 = arith.addf %135, %137 : vector<8x5xf32>
    %c0_112 = arith.constant 0 : index
    %c0_113 = arith.constant 0 : index
    %139 = vector.load %arg39[%c0_112, %c0_113] : memref<8x5xf32, #tpu.memory_space<vmem>>, vector<8x5xf32>
    tpu.vector_store %arg39[%c0_112, %c0_113], %138 {strides = array<i32>} : memref<8x5xf32, #tpu.memory_space<vmem>>, vector<8x5xf32>,
    return
  }
  func.func @transform_0(%arg0: i32) -> (i32, i32) {
    %c0_i32 = arith.constant 0 : i32
    %c0_i32_0 = arith.constant 0 : i32
    return %arg0, %c0_i32 : i32, i32
  }
  func.func @transform_1(%arg0: i32) -> (i32, i32) {
    %c0_i32 = arith.constant 0 : i32
    %c0_i32_0 = arith.constant 0 : i32
    return %arg0, %c0_i32 : i32, i32
  }
  func.func @transform_2(%arg0: i32) -> (i32, i32) {
    %c0_i32 = arith.constant 0 : i32
    %c0_i32_0 = arith.constant 0 : i32
    return %arg0, %c0_i32 : i32, i32
  }
  func.func @transform_3(%arg0: i32) -> (i32, i32) {
    %c0_i32 = arith.constant 0 : i32
    %c0_i32_0 = arith.constant 0 : i32
    return %arg0, %c0_i32 : i32, i32
  }
  func.func @transform_4(%arg0: i32) -> (i32, i32) {
    %c0_i32 = arith.constant 0 : i32
    %c0_i32_0 = arith.constant 0 : i32
    %c0_i32_1 = arith.constant 0 : i32
    return %c0_i32, %c0_i32_0 : i32, i32
  }
  func.func @transform_5(%arg0: i32) -> (i32, i32) {
    %c0_i32 = arith.constant 0 : i32
    %c0_i32_0 = arith.constant 0 : i32
    %c0_i32_1 = arith.constant 0 : i32
    return %c0_i32, %c0_i32_0 : i32, i32
  }
  func.func @transform_6(%arg0: i32) -> (i32, i32) {
    %c0_i32 = arith.constant 0 : i32
    %c0_i32_0 = arith.constant 0 : i32
    %c0_i32_1 = arith.constant 0 : i32
    return %c0_i32, %c0_i32_0 : i32, i32
  }
  func.func @transform_7(%arg0: i32) -> (i32, i32) {
    %c0_i32 = arith.constant 0 : i32
    %c0_i32_0 = arith.constant 0 : i32
    %c0_i32_1 = arith.constant 0 : i32
    return %c0_i32, %c0_i32_0 : i32, i32
  }
  func.func @transform_8(%arg0: i32) -> (i32, i32) {
    %c0_i32 = arith.constant 0 : i32
    %c0_i32_0 = arith.constant 0 : i32
    %c0_i32_1 = arith.constant 0 : i32
    return %c0_i32, %c0_i32_0 : i32, i32
  }
  func.func @transform_9(%arg0: i32) -> (i32, i32) {
    %c0_i32 = arith.constant 0 : i32
    %c0_i32_0 = arith.constant 0 : i32
    %c0_i32_1 = arith.constant 0 : i32
    return %c0_i32, %c0_i32_0 : i32, i32
  }
  func.func @transform_10(%arg0: i32) -> (i32, i32) {
    %c0_i32 = arith.constant 0 : i32
    %c0_i32_0 = arith.constant 0 : i32
    %c0_i32_1 = arith.constant 0 : i32
    return %c0_i32, %c0_i32_0 : i32, i32
  }
  func.func @transform_11(%arg0: i32) -> (i32, i32) {
    %c0_i32 = arith.constant 0 : i32
    %c0_i32_0 = arith.constant 0 : i32
    %c0_i32_1 = arith.constant 0 : i32
    return %c0_i32, %c0_i32_0 : i32, i32
  }
  func.func @transform_12(%arg0: i32) -> (i32, i32) {
    %c0_i32 = arith.constant 0 : i32
    %c0_i32_0 = arith.constant 0 : i32
    %c0_i32_1 = arith.constant 0 : i32
    return %c0_i32, %c0_i32_0 : i32, i32
  }
  func.func @transform_13(%arg0: i32) -> (i32, i32) {
    %c0_i32 = arith.constant 0 : i32
    %c0_i32_0 = arith.constant 0 : i32
    %c0_i32_1 = arith.constant 0 : i32
    return %c0_i32, %c0_i32_0 : i32, i32
  }
  func.func @transform_14(%arg0: i32) -> (i32, i32) {
    %c0_i32 = arith.constant 0 : i32
    %c0_i32_0 = arith.constant 0 : i32
    %c0_i32_1 = arith.constant 0 : i32
    return %c0_i32, %c0_i32_0 : i32, i32
  }
  func.func @transform_15(%arg0: i32) -> (i32, i32) {
    %c0_i32 = arith.constant 0 : i32
    %c0_i32_0 = arith.constant 0 : i32
    %c0_i32_1 = arith.constant 0 : i32
    return %c0_i32, %c0_i32_0 : i32, i32
  }
  func.func @transform_16(%arg0: i32) -> (i32, i32) {
    %c0_i32 = arith.constant 0 : i32
    %c0_i32_0 = arith.constant 0 : i32
    %c0_i32_1 = arith.constant 0 : i32
    return %c0_i32, %c0_i32_0 : i32, i32
  }
  func.func @transform_17(%arg0: i32) -> (i32, i32) {
    %c0_i32 = arith.constant 0 : i32
    %c0_i32_0 = arith.constant 0 : i32
    %c0_i32_1 = arith.constant 0 : i32
    return %c0_i32, %c0_i32_0 : i32, i32
  }
  func.func @transform_18(%arg0: i32) -> (i32, i32) {
    %c0_i32 = arith.constant 0 : i32
    %c0_i32_0 = arith.constant 0 : i32
    %c0_i32_1 = arith.constant 0 : i32
    return %c0_i32, %c0_i32_0 : i32, i32
  }
  func.func @transform_19(%arg0: i32) -> (i32, i32) {
    %c0_i32 = arith.constant 0 : i32
    %c0_i32_0 = arith.constant 0 : i32
    %c0_i32_1 = arith.constant 0 : i32
    return %c0_i32, %c0_i32_0 : i32, i32
  }
  func.func @transform_20(%arg0: i32) -> (i32, i32) {
    %c0_i32 = arith.constant 0 : i32
    %c0_i32_0 = arith.constant 0 : i32
    %c0_i32_1 = arith.constant 0 : i32
    return %c0_i32, %c0_i32_0 : i32, i32
  }
  func.func @transform_21(%arg0: i32) -> (i32, i32) {
    %c0_i32 = arith.constant 0 : i32
    %c0_i32_0 = arith.constant 0 : i32
    %c0_i32_1 = arith.constant 0 : i32
    return %c0_i32, %c0_i32_0 : i32, i32
  }
  func.func @transform_22(%arg0: i32) -> (i32, i32) {
    %c0_i32 = arith.constant 0 : i32
    %c0_i32_0 = arith.constant 0 : i32
    %c0_i32_1 = arith.constant 0 : i32
    return %c0_i32, %c0_i32_0 : i32, i32
  }
  func.func @transform_23(%arg0: i32) -> (i32, i32) {
    %c0_i32 = arith.constant 0 : i32
    %c0_i32_0 = arith.constant 0 : i32
    %c0_i32_1 = arith.constant 0 : i32
    return %c0_i32, %c0_i32_0 : i32, i32
  }
  func.func @transform_24(%arg0: i32) -> (i32, i32) {
    %c0_i32 = arith.constant 0 : i32
    %c0_i32_0 = arith.constant 0 : i32
    %c0_i32_1 = arith.constant 0 : i32
    return %c0_i32, %c0_i32_0 : i32, i32
  }
  func.func @transform_25(%arg0: i32) -> (i32, i32) {
    %c0_i32 = arith.constant 0 : i32
    %c0_i32_0 = arith.constant 0 : i32
    %c0_i32_1 = arith.constant 0 : i32
    return %c0_i32, %c0_i32_0 : i32, i32
  }
  func.func @transform_26(%arg0: i32) -> (i32, i32) {
    %c0_i32 = arith.constant 0 : i32
    %c0_i32_0 = arith.constant 0 : i32
    %c0_i32_1 = arith.constant 0 : i32
    return %c0_i32, %c0_i32_0 : i32, i32
  }
  func.func @transform_27(%arg0: i32) -> (i32, i32) {
    %c0_i32 = arith.constant 0 : i32
    %c0_i32_0 = arith.constant 0 : i32
    %c0_i32_1 = arith.constant 0 : i32
    return %c0_i32, %c0_i32_0 : i32, i32
  }
  func.func @transform_28(%arg0: i32) -> (i32, i32) {
    %c0_i32 = arith.constant 0 : i32
    %c0_i32_0 = arith.constant 0 : i32
    %c0_i32_1 = arith.constant 0 : i32
    return %c0_i32, %c0_i32_0 : i32, i32
  }
  func.func @transform_29(%arg0: i32) -> (i32, i32) {
    %c0_i32 = arith.constant 0 : i32
    %c0_i32_0 = arith.constant 0 : i32
    %c0_i32_1 = arith.constant 0 : i32
    return %c0_i32, %c0_i32_0 : i32, i32
  }
  func.func @transform_30(%arg0: i32) -> (i32, i32) {
    %c0_i32 = arith.constant 0 : i32
    %c0_i32_0 = arith.constant 0 : i32
    %c0_i32_1 = arith.constant 0 : i32
    return %c0_i32, %c0_i32_0 : i32, i32
  }
  func.func @transform_31(%arg0: i32) -> (i32, i32) {
    %c0_i32 = arith.constant 0 : i32
    %c0_i32_0 = arith.constant 0 : i32
    %c0_i32_1 = arith.constant 0 : i32
    return %c0_i32, %c0_i32_0 : i32, i32
  }
  func.func @transform_32(%arg0: i32) -> (i32, i32) {
    %c0_i32 = arith.constant 0 : i32
    %c0_i32_0 = arith.constant 0 : i32
    %c0_i32_1 = arith.constant 0 : i32
    return %c0_i32, %c0_i32_0 : i32, i32
  }
  func.func @transform_33(%arg0: i32) -> (i32, i32) {
    %c0_i32 = arith.constant 0 : i32
    %c0_i32_0 = arith.constant 0 : i32
    %c0_i32_1 = arith.constant 0 : i32
    return %c0_i32, %c0_i32_0 : i32, i32
  }
  func.func @transform_34(%arg0: i32) -> (i32, i32) {
    %c0_i32 = arith.constant 0 : i32
    %c0_i32_0 = arith.constant 0 : i32
    %c0_i32_1 = arith.constant 0 : i32
    return %c0_i32, %c0_i32_0 : i32, i32
  }
  func.func @transform_35(%arg0: i32) -> (i32, i32) {
    %c0_i32 = arith.constant 0 : i32
    %c0_i32_0 = arith.constant 0 : i32
    %c0_i32_1 = arith.constant 0 : i32
    return %c0_i32, %c0_i32_0 : i32, i32
  }
  func.func @transform_36(%arg0: i32) -> (i32, i32) {
    %c0_i32 = arith.constant 0 : i32
    %c0_i32_0 = arith.constant 0 : i32
    %c0_i32_1 = arith.constant 0 : i32
    return %c0_i32, %c0_i32_0 : i32, i32
  }
  func.func @transform_37(%arg0: i32) -> (i32, i32) {
    %c0_i32 = arith.constant 0 : i32
    %c0_i32_0 = arith.constant 0 : i32
    return %arg0, %c0_i32 : i32, i32
  }
  func.func @transform_38(%arg0: i32) -> (i32, i32) {
    %c0_i32 = arith.constant 0 : i32
    %c0_i32_0 = arith.constant 0 : i32
    return %arg0, %c0_i32 : i32, i32
  }
}

</mosaic_0001>

<bundles_post_ra>
// kernel: tpu_custom_call.1
= control target key start
LH: loop header
LB: loop body
LE: loop exit
PB: predicated region body
PF: predicated region fallthrough
CT: control target
= control target key end

     0   :  { %s1645_s6 = smov 1   ;;  %s1646_s10 = smov 2   ;;  %s2076_s0 = inlined_call_operand.smem [shape: u32[39], index: -1, kind: input, shape index: {}] }
   0x1   :  { %s1712_s5 = sld [smem:[%s2076_s0]]   ;;  %s1647_s14 = smov 3  }
   0x2   :  { %s1717_s9 = sld [smem:[%s2076_s0 + %s1645_s6]]   ;;  %s1648_s18 = smov 4  }
   0x3   :  { %s1722_s13 = sld [smem:[%s2076_s0 + %s1646_s10]]   ;;  %s1649_s22 = smov 5  }
   0x4   :  { %s1727_s17 = sld [smem:[%s2076_s0 + %s1647_s14]]   ;;  %s1650_s26 = smov 6  }
   0x5   :  { %s1732_s21 = sld [smem:[%s2076_s0 + %s1648_s18]]   ;;  %s1651_s30 = smov 7  }
   0x6   :  { %s1737_s25 = sld [smem:[%s2076_s0 + %s1649_s22]]   ;;  %s1652_s4 = smov 8  }
   0x7   :  { %s1742_s29 = sld [smem:[%s2076_s0 + %s1650_s26]]   ;;  %s1653_s10 = smov 9  }
   0x8   :  { %s1747_s3 = sld [smem:[%s2076_s0 + %s1651_s30]]   ;;  %s1654_s15 = smov 10  }
   0x9   :  { %s1752_s8 = sld [smem:[%s2076_s0 + %s1652_s4]]   ;;  %s1655_s20 = smov 11  }
   0xa   :  { %s1757_s14 = sld [smem:[%s2076_s0 + %s1653_s10]]   ;;  %s1656_s26 = smov 12  }
   0xb   :  { %s1762_s19 = sld [smem:[%s2076_s0 + %s1654_s15]]   ;;  %s1657_s1 = smov 13  }
   0xc   :  { %s1767_s24 = sld [smem:[%s2076_s0 + %s1655_s20]]   ;;  %s1658_s7 = smov 14  }
   0xd   :  { %s1772_s30 = sld [smem:[%s2076_s0 + %s1656_s26]]   ;;  %s1659_s15 = smov 15  }
   0xe   :  { %2084 = sst [smem:[#allocation43_spill]] %s1747_s3  ;;  %s1660_s22 = smov 16  }
   0xf   :  { %2085 = sst [smem:[#allocation44_spill]] %s1752_s8  ;;  %s1661_s28 = smov 17  }
  0x10   :  { %2086 = sst [smem:[#allocation45_spill]] %s1757_s14 }
  0x11   :  { %2087 = sst [smem:[#allocation46_spill]] %s1762_s19 }
  0x12   :  { %2088 = sst [smem:[#allocation47_spill]] %s1767_s24 }
  0x13   :  { %s1777_s6 = sld [smem:[%s2076_s0 + %s1657_s1]]  }
  0x14   :  { %s1782_s12 = sld [smem:[%s2076_s0 + %s1658_s7]]   ;;  %s1662_s7 = smov 18  }
  0x15   :  { %s1787_s20 = sld [smem:[%s2076_s0 + %s1659_s15]]   ;;  %s1663_s15 = smov 19  }
  0x16   :  { %s1792_s27 = sld [smem:[%s2076_s0 + %s1660_s22]]   ;;  %s1664_s22 = smov 20  }
  0x17   :  { %s1797_s4 = sld [smem:[%s2076_s0 + %s1661_s28]]   ;;  %s1665_s28 = smov 21  }
  0x18   :  { %s1802_s24 = sld [smem:[%s2076_s0 + %s1662_s7]]   ;;  %s1666_s7 = smov 22  }
  0x19   :  { %2089 = sst [smem:[#allocation48_spill]] %s1777_s6 }
  0x1a   :  { %s1807_s14 = sld [smem:[%s2076_s0 + %s1663_s15]]   ;;  %s1667_s15 = smov 23  }
  0x1b   :  { %2090 = sst [smem:[#allocation49_spill]] %s1787_s20 }
  0x1c   :  { %s1812_s20 = sld [smem:[%s2076_s0 + %s1664_s22]]   ;;  %s1668_s22 = smov 24  }
  0x1d   :  { %2091 = sst [smem:[#allocation50_spill]] %s1797_s4 }
  0x1e   :  { %s1817_s4 = sld [smem:[%s2076_s0 + %s1665_s28]]   ;;  %s1669_s28 = smov 25  }
  0x1f   :  { %s1822_s19 = sld [smem:[%s2076_s0 + %s1666_s7]]   ;;  %s1670_s7 = smov 26  }
  0x20   :  { %s1827_s3 = sld [smem:[%s2076_s0 + %s1667_s15]]   ;;  %s1671_s15 = smov 27  }
  0x21   :  { %s1837_s6 = sld [smem:[%s2076_s0 + %s1669_s28]]   ;;  %s1673_s28 = smov 29  }
  0x22   :  { %2092 = sst [smem:[#allocation51_spill]] %s1812_s20 }
  0x23   :  { %s1832_s20 = sld [smem:[%s2076_s0 + %s1668_s22]]   ;;  %s1672_s22 = smov 28  }
  0x24   :  { %2093 = sst [smem:[#allocation52_spill]] %s1817_s4 }
  0x25   :  { %2094 = sst [smem:[#allocation53_spill]] %s1822_s19 }
  0x26   :  { %s1842_s19 = sld [smem:[%s2076_s0 + %s1670_s7]]   ;;  %s1674_s7 = smov 30  }
  0x27   :  { %2096 = sst [smem:[#allocation55_spill]] %s1837_s6 }
  0x28   :  { %s1847_s8 = sld [smem:[%s2076_s0 + %s1671_s15]]   ;;  %s1675_s15 = smov 31  }
  0x29   :  { %2095 = sst [smem:[#allocation54_spill]] %s1832_s20 }
  0x2a   :  { %s1852_s20 = sld [smem:[%s2076_s0 + %s1672_s22]]   ;;  %s1676_s22 = smov 32  }
  0x2b   :  { %s1857_s6 = sld [smem:[%s2076_s0 + %s1673_s28]]   ;;  %s1677_s28 = smov 33  }
  0x2c   :  { %2097 = sst [smem:[#allocation56_spill]] %s1842_s19 }
  0x2d   :  { %s1862_s19 = sld [smem:[%s2076_s0 + %s1674_s7]]   ;;  %s1678_s7 = smov 34  }
  0x2e   :  { %s1867_s4 = sld [smem:[%s2076_s0 + %s1675_s15]]   ;;  %s1679_s15 = smov 35  }
  0x30   :  { %2098 = sst [smem:[#allocation57_spill]] %s1852_s20 }
  0x31   :  { %2099 = sst [smem:[#allocation58_spill]] %s1857_s6 }
  0x32   :  { %s1872_s20 = sld [smem:[%s2076_s0 + %s1676_s22]]   ;;  %s1680_s22 = smov 36  }
  0x33   :  { %2100 = sst [smem:[#allocation59_spill]] %s1862_s19 }
  0x34   :  { %2101 = sst [smem:[#allocation60_spill]] %s1867_s4 }
  0x35   :  { %s1877_s6 = sld [smem:[%s2076_s0 + %s1677_s28]]   ;;  %s1681_s28 = smov 37  }
  0x36   :  { %s1882_s19 = sld [smem:[%s2076_s0 + %s1678_s7]]   ;;  %s1682_s7 = smov 38  }
  0x37   :  { %s1887_s4 = sld [smem:[%s2076_s0 + %s1679_s15]]  }
  0x38   :  { %2102 = sst [smem:[#allocation61_spill]] %s1872_s20 }
  0x39   :  { %s1892_s20 = sld [smem:[%s2076_s0 + %s1680_s22]]  }
  0x3b   :  { %2103 = sst [smem:[#allocation62_spill]] %s1877_s6 }
  0x3c   :  { %2104 = sst [smem:[#allocation63_spill]] %s1882_s19 }
  0x3d   :  { %s1897_s6 = sld [smem:[%s2076_s0 + %s1681_s28]]  }
  0x3e   :  { %s1902_s19 = sld [smem:[%s2076_s0 + %s1682_s7]]  }
  0x3f   :  { %83 = vsyncpa [#allocation3], 0 }
  0x40   :  { %84 = vsyncpa [#allocation6], 0 }
  0x41   :  { %85 = vsyncpa [#allocation9], 0 }
  0x42   :  { %86 = vsyncpa [#allocation12], 0 }
  0x43   :  { %87 = vsyncpa [#allocation15], 0 }
  0x44   :  { %88 = vsyncpa [#allocation18], 0 }
  0x45   :  { %89 = vsyncpa [#allocation21], 0 }
  0x46   :  { %90 = vsyncpa [#allocation24], 0 }
  0x47   :  { %91 = vsyncpa [#allocation27], 0 }
  0x48   :  { %92 = vsyncpa [#allocation30], 0  ;;  %s110_s15 = sshll.u32 %s1717_s9, 4  ;;  %s111_s15 = int_to_ptr.hbm [resolvable:$true] %s110_s15 }
  0x49   :  { %93 = vsyncpa [#allocation4], 0  ;;  %s1683_s16 = smov [#allocation5]   ;;  %s132_s18 = sshll.u32 %s1727_s17, 4  ;;  %s133_s18 = int_to_ptr.hbm [resolvable:$true] %s132_s18 }
  0x4a   :  { %s112_s0 = sshll.u32 %s1683_s16, 4  ;;  %s1167_s22 = sshra.s32 %s111_s15, 4  ;;  %s113_s0 = int_to_ptr.vmem [resolvable:$true] %s112_s0  ;;  %s1168_s22 = int_to_ptr.hbm [resolvable:$true] %s1167_s22 }
  0x4b   :  { %s1169_s23 = scalar_lea.hbm %s1168_s22, 8  ;;  %s1171_s26 = scalar_lea.hbm %s1717_s9, 8 }
  0x4c   :  { %p1170_p0 = scmp.ne.s32.totalorder %s1168_s22, %s1169_s23  ;;  %p1172_p1 = scmp.lt.s32.totalorder %s1168_s22, %s1717_s9 }
  0x4d   :  { %p1173_p2 = scmp.lt.s32.totalorder %s1171_s26, %s1169_s23 }
  0x4f   :  { %p1174_p3 = por %p1173_p2, %p1172_p1 }
  0x51   :  { %p1175_p4 = pnand %p1174_p3, %p1170_p0 }
  0x53   :  { %1178 = shalt.err (!%p1175_p4)
}
  0x54   :  { %115 = dma.hbm_to_vmem [thread:$0]  %s111_s15, 128, %s113_s0, [#allocation6]  }
  0x55   :  { %s1684_s28 = smov [#allocation8]   ;;  %s154_s2 = sshll.u32 %s1737_s25, 4  ;;  %s155_s2 = int_to_ptr.hbm [resolvable:$true] %s154_s2 }
  0x56   :  { %s134_s1 = sshll.u32 %s1684_s28, 4  ;;  %s1191_s7 = sshra.s32 %s133_s18, 4  ;;  %s135_s1 = int_to_ptr.vmem [resolvable:$true] %s134_s1  ;;  %s1192_s7 = int_to_ptr.hbm [resolvable:$true] %s1191_s7 }
  0x57   :  { %s1193_s10 = scalar_lea.hbm %s1192_s7, 8  ;;  %s1195_s11 = scalar_lea.hbm %s1727_s17, 8 }
  0x58   :  { %p1194_p5 = scmp.ne.s32.totalorder %s1192_s7, %s1193_s10  ;;  %p1196_p6 = scmp.lt.s32.totalorder %s1192_s7, %s1727_s17 }
  0x59   :  { %p1197_p7 = scmp.lt.s32.totalorder %s1195_s11, %s1193_s10 }
  0x5b   :  { %p1198_p8 = por %p1197_p7, %p1196_p6 }
  0x5d   :  { %p1199_p9 = pnand %p1198_p8, %p1194_p5 }
  0x5f   :  { %1202 = shalt.err (!%p1199_p9)
}
  0x60   :  { %137 = dma.hbm_to_vmem [thread:$0]  %s133_s18, 128, %s135_s1, [#allocation9]  }
  0x61   :  { %s188_s9 = sshll.u32 %s1772_s30, 4  ;;  %s1685_s15 = smov [#allocation11]   ;;  %s189_s9 = int_to_ptr.hbm [resolvable:$true] %s188_s9 }
  0x62   :  { %s156_s16 = sshll.u32 %s1685_s15, 4  ;;  %s1215_s0 = sshra.s32 %s155_s2, 4  ;;  %s157_s16 = int_to_ptr.vmem [resolvable:$true] %s156_s16  ;;  %s1216_s0 = int_to_ptr.hbm [resolvable:$true] %s1215_s0 }
  0x63   :  { %s1217_s22 = scalar_lea.hbm %s1216_s0, 8  ;;  %s1219_s23 = scalar_lea.hbm %s1737_s25, 8 }
  0x64   :  { %p1218_p10 = scmp.ne.s32.totalorder %s1216_s0, %s1217_s22  ;;  %p1220_p11 = scmp.lt.s32.totalorder %s1216_s0, %s1737_s25 }
  0x65   :  { %p1221_p12 = scmp.lt.s32.totalorder %s1219_s23, %s1217_s22 }
  0x67   :  { %p1222_p13 = por %p1221_p12, %p1220_p11 }
  0x69   :  { %p1223_p0 = pnand %p1222_p13, %p1218_p10 }
  0x6b   :  { %1226 = shalt.err (!%p1223_p0)
}
  0x6c   :  { %159 = dma.hbm_to_vmem [thread:$0]  %s155_s2, 128, %s157_s16, [#allocation12]  }
  0x6d   :  { %s1686_s17 = smov [#allocation14]   ;;  %s1239_s26 = sshra.s32 %s189_s9, 4  ;;  %s1240_s26 = int_to_ptr.hbm [resolvable:$true] %s1239_s26 }
  0x6e   :  { %s190_s18 = sshll.u32 %s1686_s17, 4  ;;  %s1241_s28 = scalar_lea.hbm %s1240_s26, 8  ;;  %s191_s18 = int_to_ptr.vmem [resolvable:$true] %s190_s18 }
  0x6f   :  { %p1242_p1 = scmp.ne.s32.totalorder %s1240_s26, %s1241_s28  ;;  %s1243_s1 = scalar_lea.hbm %s1772_s30, 8 }
  0x70   :  { %p1244_p2 = scmp.lt.s32.totalorder %s1240_s26, %s1772_s30  ;;  %p1245_p3 = scmp.lt.s32.totalorder %s1243_s1, %s1241_s28 }
  0x72   :  { %p1246_p4 = por %p1245_p3, %p1244_p2 }
  0x74   :  { %p1247_p5 = pnand %p1246_p4, %p1242_p1 }
  0x76   :  { %1250 = shalt.err (!%p1247_p5)
}
  0x77   :  { %193 = dma.hbm_to_vmem [thread:$0]  %s189_s9, 128, %s191_s18, [#allocation15]  }
  0x78   :  { %s215_s25 = sshll.u32 %s1792_s27, 4  ;;  %s1687_s2 = smov [#allocation17]   ;;  %s216_s25 = int_to_ptr.hbm [resolvable:$true] %s215_s25 }
  0x79   :  { %s217_s7 = sshll.u32 %s1687_s2, 4  ;;  %s243_s10 = sshll.u32 %s1807_s14, 4  ;;  %s218_s7 = int_to_ptr.vmem [resolvable:$true] %s217_s7  ;;  %s244_s10 = int_to_ptr.hbm [resolvable:$true] %s243_s10 }
  0x7a   :  { %s1263_s11 = sshra.s32 %s216_s25, 4  ;;  %s1267_s30 = scalar_lea.hbm %s1792_s27, 32  ;;  %s1264_s11 = int_to_ptr.hbm [resolvable:$true] %s1263_s11 }
  0x7b   :  { %s1265_s15 = scalar_lea.hbm %s1264_s11, 32  ;;  %p1268_p7 = scmp.lt.s32.totalorder %s1264_s11, %s1792_s27 }
  0x7c   :  { %p1266_p6 = scmp.ne.s32.totalorder %s1264_s11, %s1265_s15  ;;  %p1269_p8 = scmp.lt.s32.totalorder %s1267_s30, %s1265_s15 }
  0x7e   :  { %p1270_p9 = por %p1269_p8, %p1268_p7 }
  0x80   :  { %p1271_p10 = pnand %p1270_p9, %p1266_p6 }
  0x82   :  { %1274 = shalt.err (!%p1271_p10)
}
  0x83   :  { %s1688_s9 = smov 128   ;;  %s1689_s16 = smov 8  }
  0x84   :  { %223 = dma.hbm_to_vmem [thread:$0]  %s216_s25, 512, %s218_s7, [#allocation18], %s1688_s9, %s1688_s9, %s1689_s16  }
  0x85   :  { %s1690_s0 = smov [#allocation20]   ;;  %s273_s23 = sshll.u32 %s1827_s3, 4  ;;  %s1924_s23 = int_to_ptr.hbm [resolvable:$true] %s273_s23 }
  0x86   :  { %s245_s22 = sshll.u32 %s1690_s0, 4  ;;  %s1287_s27 = sshra.s32 %s244_s10, 4  ;;  %s246_s22 = int_to_ptr.vmem [resolvable:$true] %s245_s22  ;;  %s1288_s27 = int_to_ptr.hbm [resolvable:$true] %s1287_s27 }
  0x87   :  { %s1289_s17 = scalar_lea.hbm %s1288_s27, 32  ;;  %s1291_s18 = scalar_lea.hbm %s1807_s14, 32 }
  0x88   :  { %p1290_p11 = scmp.ne.s32.totalorder %s1288_s27, %s1289_s17  ;;  %p1292_p12 = scmp.lt.s32.totalorder %s1288_s27, %s1807_s14 }
  0x89   :  { %p1293_p13 = scmp.lt.s32.totalorder %s1291_s18, %s1289_s17 }
  0x8b   :  { %p1294_p0 = por %p1293_p13, %p1292_p12 }
  0x8d   :  { %p1295_p1 = pnand %p1294_p0, %p1290_p11 }
  0x8f   :  { %1298 = shalt.err (!%p1295_p1)
}
  0x90   :  { %251 = dma.hbm_to_vmem [thread:$0]  %s244_s10, 512, %s246_s22, [#allocation21], %s1688_s9, %s1688_s9, %s1689_s16  }
  0x91   :  { %s303_s26 = sshll.u32 %s1847_s8, 4  ;;  %s1691_s28 = smov [#allocation23]   ;;  %s1932_s26 = int_to_ptr.hbm [resolvable:$true] %s303_s26 }
  0x92   :  { %s275_s1 = sshll.u32 %s1691_s28, 4  ;;  %s1311_s25 = sshra.s32 %s1924_s23, 4  ;;  %s276_s1 = int_to_ptr.vmem [resolvable:$true] %s275_s1  ;;  %s1312_s25 = int_to_ptr.hbm [resolvable:$true] %s1311_s25 }
  0x93   :  { %s1313_s14 = scalar_lea.hbm %s1312_s25, 32  ;;  %s1315_s2 = scalar_lea.hbm %s1827_s3, 32 }
  0x94   :  { %p1314_p2 = scmp.ne.s32.totalorder %s1312_s25, %s1313_s14  ;;  %p1316_p3 = scmp.lt.s32.totalorder %s1312_s25, %s1827_s3 }
  0x95   :  { %p1317_p4 = scmp.lt.s32.totalorder %s1315_s2, %s1313_s14 }
  0x97   :  { %p1318_p5 = por %p1317_p4, %p1316_p3 }
  0x99   :  { %p1319_p6 = pnand %p1318_p5, %p1314_p2 }
  0x9b   :  { %1322 = shalt.err (!%p1319_p6)
}
  0x9c   :  { %281 = dma.hbm_to_vmem [thread:$0]  %s1924_s23, 512, %s276_s1, [#allocation24], %s1688_s9, %s1688_s9, %s1689_s16  }
  0x9d   :  { %s1692_s7 = smov [#allocation26]   ;;  %s99_s11 = sshll.u32 %s1712_s5, 4  ;;  %s100_s11 = int_to_ptr.hbm [resolvable:$true] %s99_s11 }
  0x9e   :  { %s305_s10 = sshll.u32 %s1692_s7, 4  ;;  %s1335_s15 = sshra.s32 %s1932_s26, 4  ;;  %s306_s10 = int_to_ptr.vmem [resolvable:$true] %s305_s10  ;;  %s1336_s15 = int_to_ptr.hbm [resolvable:$true] %s1335_s15 }
  0x9f   :  { %s1337_s3 = scalar_lea.hbm %s1336_s15, 32  ;;  %s1339_s30 = scalar_lea.hbm %s1847_s8, 32 }
  0xa0   :  { %p1338_p7 = scmp.ne.s32.totalorder %s1336_s15, %s1337_s3  ;;  %p1340_p8 = scmp.lt.s32.totalorder %s1336_s15, %s1847_s8 }
  0xa1   :  { %p1341_p9 = scmp.lt.s32.totalorder %s1339_s30, %s1337_s3 }
  0xa3   :  { %p1342_p10 = por %p1341_p9, %p1340_p8 }
  0xa5   :  { %p1343_p11 = pnand %p1342_p10, %p1338_p7 }
  0xa7   :  { %1346 = shalt.err (!%p1343_p11)
}
  0xa8   :  { %311 = dma.hbm_to_vmem [thread:$0]  %s1932_s26, 512, %s306_s10, [#allocation27], %s1688_s9, %s1688_s9, %s1689_s16  }
  0xa9   :  { %s121_s0 = sshll.u32 %s1722_s13, 4  ;;  %s1693_s22 = smov [#allocation2]   ;;  %s122_s0 = int_to_ptr.hbm [resolvable:$true] %s121_s0 }
  0xaa   :  { %s101_s23 = sshll.u32 %s1693_s22, 4  ;;  %s1359_s27 = sshra.s32 %s100_s11, 4  ;;  %s102_s23 = int_to_ptr.vmem [resolvable:$true] %s101_s23  ;;  %s1360_s27 = int_to_ptr.hbm [resolvable:$true] %s1359_s27 }
  0xab   :  { %s1361_s8 = scalar_lea.hbm %s1360_s27, 8  ;;  %s1363_s17 = scalar_lea.hbm %s1712_s5, 8 }
  0xac   :  { %p1362_p12 = scmp.ne.s32.totalorder %s1360_s27, %s1361_s8  ;;  %p1364_p13 = scmp.lt.s32.totalorder %s1360_s27, %s1712_s5 }
  0xad   :  { %p1365_p0 = scmp.lt.s32.totalorder %s1363_s17, %s1361_s8 }
  0xaf   :  { %p1366_p1 = por %p1365_p0, %p1364_p13 }
  0xb1   :  { %p1367_p2 = pnand %p1366_p1, %p1362_p12 }
  0xb3   :  { %1370 = shalt.err (!%p1367_p2)
}
  0xb4   :  { %104 = dma.hbm_to_vmem [thread:$0]  %s100_s11, 128, %s102_s23, [#allocation3]  }
  0xb5   :  { %s1694_s18 = smov [#allocation7]   ;;  %s143_s28 = sshll.u32 %s1732_s21, 4  ;;  %s144_s28 = int_to_ptr.hbm [resolvable:$true] %s143_s28 }
  0xb6   :  { %s123_s26 = sshll.u32 %s1694_s18, 4  ;;  %s1383_s1 = sshra.s32 %s122_s0, 4  ;;  %s124_s26 = int_to_ptr.vmem [resolvable:$true] %s123_s26  ;;  %s1384_s1 = int_to_ptr.hbm [resolvable:$true] %s1383_s1 }
  0xb7   :  { %s1385_s25 = scalar_lea.hbm %s1384_s1, 8  ;;  %s1387_s14 = scalar_lea.hbm %s1722_s13, 8 }
  0xb8   :  { %p1386_p3 = scmp.ne.s32.totalorder %s1384_s1, %s1385_s25  ;;  %p1388_p4 = scmp.lt.s32.totalorder %s1384_s1, %s1722_s13 }
  0xb9   :  { %p1389_p5 = scmp.lt.s32.totalorder %s1387_s14, %s1385_s25 }
  0xbb   :  { %p1390_p6 = por %p1389_p5, %p1388_p4 }
  0xbd   :  { %p1391_p7 = pnand %p1390_p6, %p1386_p3 }
  0xbf   :  { %1394 = shalt.err (!%p1391_p7)
}
  0xc0   :  { %126 = dma.hbm_to_vmem [thread:$0]  %s122_s0, 128, %s124_s26, [#allocation6]  }
  0xc1   :  { %s164_s5 = sshll.u32 %s1742_s29, 4  ;;  %s1695_s2 = smov [#allocation10]   ;;  %s1956_s5 = int_to_ptr.hbm [resolvable:$true] %s164_s5 }
  0xc2   :  { %s145_s7 = sshll.u32 %s1695_s2, 4  ;;  %s1407_s10 = sshra.s32 %s144_s28, 4  ;;  %s146_s7 = int_to_ptr.vmem [resolvable:$true] %s145_s7  ;;  %s1408_s10 = int_to_ptr.hbm [resolvable:$true] %s1407_s10 }
  0xc3   :  { %s1409_s11 = scalar_lea.hbm %s1408_s10, 8  ;;  %s1411_s15 = scalar_lea.hbm %s1732_s21, 8 }
  0xc4   :  { %p1410_p8 = scmp.ne.s32.totalorder %s1408_s10, %s1409_s11  ;;  %p1412_p9 = scmp.lt.s32.totalorder %s1408_s10, %s1732_s21 }
  0xc5   :  { %p1413_p10 = scmp.lt.s32.totalorder %s1411_s15, %s1409_s11 }
  0xc7   :  { %p1414_p11 = por %p1413_p10, %p1412_p9 }
  0xc9   :  { %p1415_p12 = pnand %p1414_p11, %p1410_p8 }
  0xcb   :  { %1418 = shalt.err (!%p1415_p12)
}
  0xcc   :  { %148 = dma.hbm_to_vmem [thread:$0]  %s144_s28, 128, %s146_s7, [#allocation9]  }
  0xcd   :  { %s1696_s13 = smov [#allocation13]   ;;  %s200_s30 = sshll.u32 %s1782_s12, 4  ;;  %s1961_s30 = int_to_ptr.hbm [resolvable:$true] %s200_s30 }
  0xce   :  { %s166_s3 = sshll.u32 %s1696_s13, 4  ;;  %s1431_s0 = sshra.s32 %s1956_s5, 4  ;;  %s167_s3 = int_to_ptr.vmem [resolvable:$true] %s166_s3  ;;  %s1432_s0 = int_to_ptr.hbm [resolvable:$true] %s1431_s0 }
  0xcf   :  { %s1433_s22 = scalar_lea.hbm %s1432_s0, 24  ;;  %s1435_s21 = scalar_lea.hbm %s1742_s29, 24 }
  0xd0   :  { %p1434_p13 = scmp.ne.s32.totalorder %s1432_s0, %s1433_s22  ;;  %p1436_p0 = scmp.lt.s32.totalorder %s1432_s0, %s1742_s29 }
  0xd1   :  { %p1437_p1 = scmp.lt.s32.totalorder %s1435_s21, %s1433_s22 }
  0xd3   :  { %p1438_p2 = por %p1437_p1, %p1436_p0 }
  0xd5   :  { %p1439_p3 = pnand %p1438_p2, %p1434_p13 }
  0xd7   :  { %1442 = shalt.err (!%p1439_p3)
}
  0xd8   :  { %172 = dma.hbm_to_vmem [thread:$0]  %s1956_s5, 384, %s167_s3, [#allocation12], %s1688_s9, %s1688_s9, %s1689_s16  }
  0xd9   :  { %s230_s23 = sshll.u32 %s1802_s24, 4  ;;  %s1697_s27 = smov [#allocation16]   ;;  %s1971_s23 = int_to_ptr.hbm [resolvable:$true] %s230_s23 }
  0xda   :  { %s202_s8 = sshll.u32 %s1697_s27, 4  ;;  %s1455_s29 = sshra.s32 %s1961_s30, 4  ;;  %s203_s8 = int_to_ptr.vmem [resolvable:$true] %s202_s8  ;;  %s1456_s29 = int_to_ptr.hbm [resolvable:$true] %s1455_s29 }
  0xdb   :  { %s1457_s17 = scalar_lea.hbm %s1456_s29, 32  ;;  %s1459_s18 = scalar_lea.hbm %s1782_s12, 32 }
  0xdc   :  { %p1458_p4 = scmp.ne.s32.totalorder %s1456_s29, %s1457_s17  ;;  %p1460_p5 = scmp.lt.s32.totalorder %s1456_s29, %s1782_s12 }
  0xdd   :  { %p1461_p6 = scmp.lt.s32.totalorder %s1459_s18, %s1457_s17 }
  0xdf   :  { %p1462_p7 = por %p1461_p6, %p1460_p5 }
  0xe1   :  { %p1463_p8 = pnand %p1462_p7, %p1458_p4 }
  0xe3   :  { %1466 = shalt.err (!%p1463_p8)
}
  0xe4   :  { %s2105_s26 = sld [smem:[#allocation52_spill]]  ;;  %s1698_s28 = smov [#allocation19]  }
  0xe5   :  { %208 = dma.hbm_to_vmem [thread:$0]  %s1961_s30, 512, %s203_s8, [#allocation15], %s1688_s9, %s1688_s9, %s1689_s16  }
  0xe6   :  { %s232_s1 = sshll.u32 %s1698_s28, 4  ;;  %s1479_s12 = sshra.s32 %s1971_s23, 4  ;;  %s233_s1 = int_to_ptr.vmem [resolvable:$true] %s232_s1  ;;  %s1480_s12 = int_to_ptr.hbm [resolvable:$true] %s1479_s12 }
  0xe7   :  { %s1481_s14 = scalar_lea.hbm %s1480_s12, 32  ;;  %s1483_s5 = scalar_lea.hbm %s1802_s24, 32 }
  0xe8   :  { %p1482_p9 = scmp.ne.s32.totalorder %s1480_s12, %s1481_s14  ;;  %p1484_p10 = scmp.lt.s32.totalorder %s1480_s12, %s1802_s24 }
  0xe9   :  { %p1485_p11 = scmp.lt.s32.totalorder %s1483_s5, %s1481_s14 }
  0xea   :  { %s258_s25 = sshll.u32 %s2105_s26, 4  ;;  %s1981_s25 = int_to_ptr.hbm [resolvable:$true] %s258_s25 }
  0xeb   :  { %p1486_p12 = por %p1485_p11, %p1484_p10 }
  0xed   :  { %p1487_p13 = pnand %p1486_p12, %p1482_p9 }
  0xef   :  { %1490 = shalt.err (!%p1487_p13)
}
  0xf0   :  { %s2106_s2 = sld [smem:[#allocation55_spill]]  ;;  %s1699_s10 = smov [#allocation22]  }
  0xf1   :  { %238 = dma.hbm_to_vmem [thread:$0]  %s1971_s23, 512, %s233_s1, [#allocation18], %s1688_s9, %s1688_s9, %s1689_s16  }
  0xf2   :  { %s260_s11 = sshll.u32 %s1699_s10, 4  ;;  %s1503_s24 = sshra.s32 %s1981_s25, 4  ;;  %s261_s11 = int_to_ptr.vmem [resolvable:$true] %s260_s11  ;;  %s1504_s24 = int_to_ptr.hbm [resolvable:$true] %s1503_s24 }
  0xf3   :  { %s1505_s15 = scalar_lea.hbm %s1504_s24, 32  ;;  %s1507_s13 = scalar_lea.hbm %s2105_s26, 32 }
  0xf4   :  { %p1506_p0 = scmp.ne.s32.totalorder %s1504_s24, %s1505_s15  ;;  %p1508_p1 = scmp.lt.s32.totalorder %s1504_s24, %s2105_s26 }
  0xf5   :  { %p1509_p2 = scmp.lt.s32.totalorder %s1507_s13, %s1505_s15 }
  0xf6   :  { %s288_s7 = sshll.u32 %s2106_s2, 4  ;;  %s1991_s7 = int_to_ptr.hbm [resolvable:$true] %s288_s7 }
  0xf7   :  { %p1510_p3 = por %p1509_p2, %p1508_p1 }
  0xf9   :  { %p1511_p4 = pnand %p1510_p3, %p1506_p0 }
  0xfb   :  { %1514 = shalt.err (!%p1511_p4)
}
  0xfc   :  { %s2107_s3 = sld [smem:[#allocation60_spill]]  ;;  %s1700_s30 = smov [#allocation25]  }
  0xfd   :  { %266 = dma.hbm_to_vmem [thread:$0]  %s1981_s25, 512, %s261_s11, [#allocation21], %s1688_s9, %s1688_s9, %s1689_s16  }
  0xfe   :  { %s290_s0 = sshll.u32 %s1700_s30, 4  ;;  %s1527_s21 = sshra.s32 %s1991_s7, 4  ;;  %s291_s0 = int_to_ptr.vmem [resolvable:$true] %s290_s0  ;;  %s1528_s21 = int_to_ptr.hbm [resolvable:$true] %s1527_s21 }
  0xff   :  { %s1529_s23 = scalar_lea.hbm %s1528_s21, 32  ;;  %s1531_s27 = scalar_lea.hbm %s2106_s2, 32 }
 0x100   :  { %p1530_p5 = scmp.ne.s32.totalorder %s1528_s21, %s1529_s23  ;;  %p1532_p6 = scmp.lt.s32.totalorder %s1528_s21, %s2106_s2 }
 0x101   :  { %p1533_p7 = scmp.lt.s32.totalorder %s1531_s27, %s1529_s23 }
 0x102   :  { %s322_s22 = sshll.u32 %s2107_s3, 4  ;;  %s2001_s22 = int_to_ptr.hbm [resolvable:$true] %s322_s22 }
 0x103   :  { %p1534_p8 = por %p1533_p7, %p1532_p6 }
 0x105   :  { %p1535_p9 = pnand %p1534_p8, %p1530_p5 }
 0x107   :  { %1538 = shalt.err (!%p1535_p9)
}
 0x108   :  { %s2108_s8 = sld [smem:[#allocation62_spill]]  ;;  %s1701_s17 = smov [#allocation28]  }
 0x109   :  { %296 = dma.hbm_to_vmem [thread:$0]  %s1991_s7, 512, %s291_s0, [#allocation24], %s1688_s9, %s1688_s9, %s1689_s16  }
 0x10a   :  { %s324_s18 = sshll.u32 %s1701_s17, 4  ;;  %s1551_s26 = sshra.s32 %s2001_s22, 4  ;;  %s325_s18 = int_to_ptr.vmem [resolvable:$true] %s324_s18  ;;  %s1552_s26 = int_to_ptr.hbm [resolvable:$true] %s1551_s26 }
 0x10b   :  { %s1553_s28 = scalar_lea.hbm %s1552_s26, 32  ;;  %s1555_s1 = scalar_lea.hbm %s2107_s3, 32 }
 0x10c   :  { %p1554_p10 = scmp.ne.s32.totalorder %s1552_s26, %s1553_s28  ;;  %p1556_p11 = scmp.lt.s32.totalorder %s1552_s26, %s2107_s3 }
 0x10d   :  { %p1557_p12 = scmp.lt.s32.totalorder %s1555_s1, %s1553_s28 }
 0x10e   :  { %s337_s29 = sshll.u32 %s2108_s8, 4  ;;  %s2011_s29 = int_to_ptr.hbm [resolvable:$true] %s337_s29 }
 0x10f   :  { %p1558_p13 = por %p1557_p12, %p1556_p11 }
 0x111   :  { %p1559_p0 = pnand %p1558_p13, %p1554_p10 }
 0x113   :  { %1562 = shalt.err (!%p1559_p0)
}
 0x114   :  { %330 = dma.hbm_to_vmem [thread:$0]  %s2001_s22, 512, %s325_s18, [#allocation27], %s1688_s9, %s1688_s9, %s1689_s16  }
 0x115   :  { %s1702_s25 = smov [#allocation29]   ;;  %s1575_s14 = sshra.s32 %s2011_s29, 4  ;;  %s1576_s14 = int_to_ptr.hbm [resolvable:$true] %s1575_s14 }
 0x116   :  { %s339_s12 = sshll.u32 %s1702_s25, 4  ;;  %s1577_s5 = scalar_lea.hbm %s1576_s14, 32  ;;  %s340_s12 = int_to_ptr.vmem [resolvable:$true] %s339_s12 }
 0x117   :  { %p1578_p1 = scmp.ne.s32.totalorder %s1576_s14, %s1577_s5  ;;  %s1579_s2 = scalar_lea.hbm %s2108_s8, 32 }
 0x118   :  { %p1580_p2 = scmp.lt.s32.totalorder %s1576_s14, %s2108_s8  ;;  %p1581_p3 = scmp.lt.s32.totalorder %s1579_s2, %s1577_s5 }
 0x11a   :  { %p1582_p4 = por %p1581_p3, %p1580_p2 }
 0x11c   :  { %p1583_p5 = pnand %p1582_p4, %p1578_p1 }
 0x11e   :  { %1586 = shalt.err (!%p1583_p5)
}
 0x11f   :  { %345 = dma.hbm_to_vmem [thread:$0]  %s2011_s29, 512, %s340_s12, [#allocation30], %s1688_s9, %s1688_s9, %s1689_s16  }
 0x120   :  { %1623 = dma.done.wait [#allocation3], 128  }
 0x121   :  { %1624 = vsyncadd [#allocation3], 4294967168 }
 0x122   :  { %1625 = dma.done.wait [#allocation6], 256  }
 0x123   :  { %1626 = vsyncadd [#allocation6], 4294967040 }
 0x124   :  { %1627 = dma.done.wait [#allocation9], 256  }
 0x125   :  { %1628 = vsyncadd [#allocation9], 4294967040 }
 0x126   :  { %1629 = dma.done.wait [#allocation12], 512  }
 0x127   :  { %1630 = vsyncadd [#allocation12], 4294966784 }
 0x128   :  { %1631 = dma.done.wait [#allocation15], 640  }
 0x129   :  { %1632 = vsyncadd [#allocation15], 4294966656 }
 0x12a   :  { %1633 = dma.done.wait [#allocation18], 1024  }
 0x12b   :  { %1634 = vsyncadd [#allocation18], 4294966272 }
 0x12c   :  { %1635 = dma.done.wait [#allocation21], 1024  }
 0x12d   :  { %1636 = vsyncadd [#allocation21], 4294966272 }
 0x12e   :  { %1637 = dma.done.wait [#allocation24], 1024  }
 0x12f   :  { %1638 = vsyncadd [#allocation24], 4294966272 }
 0x130   :  { %1639 = dma.done.wait [#allocation27], 1024  }
 0x131   :  { %1640 = vsyncadd [#allocation27], 4294966272 }
 0x132   :  { %1641 = dma.done.wait [#allocation30], 512  }
 0x133   :  { %1642 = vsyncadd [#allocation30], 4294966784  ;;  %vm426_vm0 = vcmask 64512   ;;  %v425_v0 = vld [vmem:[#allocation10] sm:$0xff]  ;;  %v451_v1 = vld [vmem:[#allocation11] sm:$0xff]  ;;  %vm588_vm1 = vcmask 1045504  }
 0x134   :  { %v424_v2 = vld [vmem:[#allocation7] sm:$0xff]  ;;  %445 = vmatpush.msra.mxu0 %v425_v0  ;;  %470 = vmatpush.msra.mxu1 %v451_v1  ;;  %v450_v3 = vld [vmem:[#allocation8] sm:$0xff]  ;;  %v579_v4 = vld [vmem:[#allocation14] sm:$0x3f]  ;;  %s2109_s9 = sld [smem:[#allocation44_spill]]  ;;  %vm484_vm2 = vcmask 195584  }
 0x135   :  { %v479_v5 = vld [vmem:[#allocation13 + $0x10] sm:$0xff]  ;;  %1074 = vmatmul.msk.f32.vlgmr.msra.gmra.mxu0 %vm426_vm0, %v424_v2  ;;  %1075 = vmatmul.msk.f32.vlgmr.msra.gmra.mxu1 %vm426_vm0, %v450_v3  ;;  %v478_v6 = vld [vmem:[#allocation13 + $0x8] sm:$0xff]  ;;  %v477_v7 = vld [vmem:[#allocation13] sm:$0xff]  ;;  %vm584_vm3 = vcmask 48128   ;;  %s2110_s16 = sld [smem:[#allocation48_spill]]  ;;  %vm519_vm5 = vcmask 261120  }
 0x136   :  { %1079 = vmatpush.msk.msrb.mxu1 %vm588_vm1, %v579_v4  ;;  %501 = vmatpush.msra.mxu2 %v479_v5  ;;  %v618_v8 = vld [vmem:[#allocation16 + $0x18] sm:$0xff]  ;;  %v475_v9 = vld [vmem:[#allocation2] sm:$0xff]  ;;  %v616_v16 = vld [vmem:[#allocation16 + $0x8] sm:$0xff]  ;;  %s2111_s7 = sld [smem:[#allocation43_spill]]  ;;  %s1015_s18 = sshll.u32 %s1902_s19, 4  ;;  %vm906_vm15 = vcmask 23552   ;;  %s1016_s18 = int_to_ptr.hbm [resolvable:$true] %s1015_s18 }
 0x137   :  { %v577_v10 = vld [vmem:[#allocation5] sm:$0xff]  ;;  %v617_v15 = vld [vmem:[#allocation16 + $0x10] sm:$0xff]  ;;  %v615_v17 = vld [vmem:[#allocation16] sm:$0xff]  ;;  %s2112_s10 = sld [smem:[#allocation46_spill]]  ;;  %vm1004_vm0 = vcmask 39936   ;;  %s1611_s26 = sshra.s32 %s1016_s18, 4  ;;  %s1612_s26 = int_to_ptr.hbm [resolvable:$true] %s1611_s26 }
 0x138   :  { %502 = vmatpush.msra.mxu2 %v478_v6  ;;  %v652_v22 = vld [vmem:[#allocation17 + $0x18] sm:$0xff]  ;;  %v651_v33 = vld [vmem:[#allocation17 + $0x10] sm:$0xff]  ;;  %v650_v34 = vld [vmem:[#allocation17 + $0x8] sm:$0xff]  ;;  %s2113_s11 = sld [smem:[#allocation49_spill]]  ;;  %s1613_s28 = scalar_lea.hbm %s1612_s26, 8 }
 0x139   :  { %v649_v36 = vld [vmem:[#allocation17] sm:$0xff]  ;;  %v687_v40 = vld [vmem:[#allocation20 + $0x18] sm:$0xff]  ;;  %s2114_s24 = sld [smem:[#allocation45_spill]]  ;;  %v686_v42 = vld [vmem:[#allocation20 + $0x10] sm:$0xff]  ;;  %p1614_p6 = scmp.ne.s32.totalorder %s1612_s26, %s1613_s28 }
 0x13a   :  { %503 = vmatpush.msra.mxu2 %v477_v7  ;;  %v514_v18 = vld [vmem:[%s2109_s9 + $0x18] sm:$0xff]  ;;  %v513_v19 = vld [vmem:[%s2109_s9 + $0x10] sm:$0xff]  ;;  %v512_v20 = vld [vmem:[%s2109_s9 + $0x8] sm:$0xff]  ;;  %s2115_s15 = sld [smem:[#allocation47_spill]]  ;;  %p1616_p7 = scmp.lt.s32.totalorder %s1612_s26, %s1902_s19 }
 0x13b   :  { %535 = vmatpush.msra.mxu3 %v514_v18  ;;  %v511_v21 = vld [vmem:[%s2109_s9] sm:$0xff]  ;;  %v683_v41 = vld [vmem:[#allocation19 + $0x18] sm:$0xff]  ;;  %v685_v44 = vld [vmem:[#allocation20 + $0x8] sm:$0xff]  ;;  %s2116_s13 = sld [smem:[#allocation50_spill]] }
 0x13c   :  { %638 = vmatpush.msrb.mxu2 %v618_v8  ;;  %v1152_v23 = vld [vmem:[%s2110_s16] ss:$0 sm:$0xff]  ;;  %726 = vmatpush.msra.mxu1 %v683_v41  ;;  %v681_v45 = vld [vmem:[#allocation19 + $0x8] sm:$0xff]  ;;  %v684_v56 = vld [vmem:[#allocation20] sm:$0xff]  ;;  %s2117_s3 = sld [smem:[#allocation51_spill]] }
 0x13d   :  { %536 = vmatpush.msra.mxu3 %v513_v19  ;;  %v1153_v27 = vld [vmem:[%s2111_s7] ss:$0 sm:$0xff]  ;;  %v549_v35 = vld [vmem:[%s2112_s10 + $0x18] sm:$0xff]  ;;  %v548_v37 = vld [vmem:[%s2112_s10 + $0x10] sm:$0xff]  ;;  %s2118_s30 = sld [smem:[#allocation53_spill]] }
 0x13e   :  { %639 = vmatpush.msrb.mxu2 %v617_v15  ;;  %569 = vmatpush.msrb.mxu0 %v549_v35  ;;  %v547_v38 = vld [vmem:[%s2112_s10 + $0x8] sm:$0xff]  ;;  %v546_v39 = vld [vmem:[%s2112_s10] sm:$0xff]  ;;  %v680_v57 = vld [vmem:[#allocation19] sm:$0xff]  ;;  %s2119_s0 = sld [smem:[#allocation54_spill]] }
 0x13f   :  { %537 = vmatpush.msra.mxu3 %v512_v20  ;;  %v682_v43 = vld [vmem:[#allocation19 + $0x10] sm:$0xff]  ;;  %v745_v0 = vld [vmem:[#allocation22 + $0x18] sm:$0xff]  ;;  %v743_v2 = vld [vmem:[#allocation22 + $0x8] sm:$0xff]  ;;  %s2120_s22 = sld [smem:[#allocation58_spill]] }
 0x140   :  { %640 = vmatpush.msrb.mxu2 %v616_v16  ;;  %570 = vmatpush.msrb.mxu0 %v548_v37  ;;  %v1154_v46 = vld [vmem:[%s2113_s11] ss:$0 sm:$0xff]  ;;  %v742_v3 = vld [vmem:[#allocation22] sm:$0xff]  ;;  %v779_v4 = vld [vmem:[#allocation23 + $0x18] sm:$0xff]  ;;  %s2121_s21 = sld [smem:[#allocation56_spill]] }
 0x141   :  { %538 = vmatpush.msra.mxu3 %v511_v21  ;;  %727 = vmatpush.msra.mxu1 %v682_v43  ;;  %v1155_v50 = vld [vmem:[%s2114_s24] ss:$0 sm:$0xff]  ;;  %v911_v15 = vld [vmem:[#allocation28 + $0x18] sm:$0xff]  ;;  %v909_v19 = vld [vmem:[#allocation28 + $0x8] sm:$0xff]  ;;  %s2122_s23 = sld [smem:[#allocation61_spill]] }
 0x142   :  { %641 = vmatpush.msrb.mxu2 %v615_v17  ;;  %571 = vmatpush.msrb.mxu0 %v547_v38  ;;  %v1156_v58 = vld [vmem:[%s2115_s15] ss:$0 sm:$0xff]  ;;  %v810_v16 = vld [vmem:[#allocation25 + $0x18] sm:$0xff]  ;;  %v841_v35 = vld [vmem:[#allocation26] sm:$0xff]  ;;  %s2123_s27 = sld [smem:[#allocation57_spill]] }
 0x143   :  { %672 = vmatpush.msrb.mxu3 %v652_v22  ;;  %728 = vmatpush.msra.mxu1 %v681_v45  ;;  %v1157_v59 = vld [vmem:[%s2116_s13] ss:$0 sm:$0xff]  ;;  %v940_v37 = vld [vmem:[#allocation29 + $0x8] sm:$0xff]  ;;  %v939_v38 = vld [vmem:[#allocation29] sm:$0xff]  ;;  %s2124_s8 = sld [smem:[#allocation63_spill]] }
 0x144   :  { %572 = vmatpush.msrb.mxu0 %v546_v39  ;;  %v744_v1 = vld [vmem:[#allocation22 + $0x10] sm:$0xff]  ;;  %s2125_s29 = sld [smem:[#allocation59_spill]] }
 0x145   :  { %673 = vmatpush.msrb.mxu3 %v651_v33  ;;  %729 = vmatpush.msra.mxu1 %v680_v57  ;;  %v1158_v5 = vld [vmem:[%s2117_s3] ss:$0 sm:$0xff]  ;;  %v842_v33 = vld [vmem:[#allocation26 + $0x8] sm:$0xff] }
 0x146   :  { %703 = vmatpush.msra.mxu0 %v687_v40  ;;  %v910_v17 = vld [vmem:[#allocation28 + $0x10] sm:$0xff]  ;;  %v878_v39 = vld [vmem:[%s2120_s22 + $0x18] sm:$0xff] }
 0x147   :  { %674 = vmatpush.msrb.mxu3 %v650_v34  ;;  %v809_v18 = vld [vmem:[#allocation25 + $0x10] sm:$0xff]  ;;  %v942_v34 = vld [vmem:[#allocation29 + $0x18] sm:$0xff] }
 0x148   :  { %704 = vmatpush.msra.mxu0 %v686_v42  ;;  %v1159_v20 = vld [vmem:[%s2118_s30] ss:$0 sm:$0xff] }
 0x149   :  { %675 = vmatpush.msrb.mxu3 %v649_v36  ;;  %v941_v36 = vld [vmem:[#allocation29 + $0x10] sm:$0xff] }
 0x14a   :  { %705 = vmatpush.msra.mxu0 %v685_v44  ;;  %v1161_v40 = vld [vmem:[%s2121_s21] ss:$0 sm:$0xff] }
 0x14b   :  { %v1162_v44 = vld [vmem:[%s2122_s23] ss:$0 sm:$0xff] }
 0x14c   :  { %706 = vmatpush.msra.mxu0 %v684_v56  ;;  %v973_v56 = vld [vmem:[%s1887_s4] sm:$0xff] }
 0x14d   :  { %v1163_v57 = vld [vmem:[%s2123_s27] ss:$0 sm:$0xff] }
 0x1b2   :  { %v447_v11 = vpop.f32.mrf.mxu0  ;;  %v472_v12 = vpop.f32.mrf.mxu1 }
 0x1b3   :  { %v476_v13 = vmul.f32 %v475_v9, %v447_v11  ;;  %v578_v14 = vmul.f32 %v577_v10, %v472_v12  ;;  %v778_v12 = vld [vmem:[#allocation23 + $0x10] sm:$0xff] }
 0x1b5   :  { %1076 = vmatmul.msk.f32.vlgmr.msra.gmra.mxu2 %vm484_vm2, %v476_v13  ;;  %1080 = vmatmul.msk.f32.vlgmr.msrb.gmra.mxu1 %vm584_vm3, %v578_v14  ;;  %v777_v13 = vld [vmem:[#allocation23 + $0x8] sm:$0xff]  ;;  %v776_v14 = vld [vmem:[#allocation23] sm:$0xff] }
 0x1b6   :  { %765 = vmatpush.msra.mxu2 %v745_v0 }
 0x1b8   :  { %766 = vmatpush.msra.mxu2 %v744_v1 }
 0x1ba   :  { %767 = vmatpush.msra.mxu2 %v743_v2 }
 0x1bc   :  { %768 = vmatpush.msra.mxu2 %v742_v3  ;;  %v1165_v3 = vld [vmem:[%s2125_s29] ss:$0 sm:$0xff] }
 0x232   :  { %v609_v24 = vpop.f32.mrf.mxu1 }
 0x233   :  { %v610_v25 = vadd.f32 %v1152_v23, %v609_v24 }
 0x235   :  { %vm612_vm4 = vcmp.gt.f32.partialorder %v610_v25, 0.0  ;;  %v613_v26 = vmul.f32 0.05, %v610_v25 }
 0x237   :  { %v614_v28 = vsel %vm612_vm4, %v610_v25, %v613_v26  ;;  %v808_v25 = vld [vmem:[#allocation25 + $0x8] sm:$0xff]  ;;  %v908_v26 = vld [vmem:[#allocation28] sm:$0xff] }
 0x238   :  { %v505_v29 = vpop.f32.mrf.mxu2  ;;  %1081 = vmatmul.msk.f32.vlgmr.msrb.gmra.mxu2 %vm519_vm5, %v614_v28  ;;  %v844_v28 = vld [vmem:[#allocation26 + $0x18] sm:$0xff] }
 0x239   :  { %v506_v30 = vadd.f32 %v1153_v27, %v505_v29  ;;  %v807_v27 = vld [vmem:[#allocation25] sm:$0xff]  ;;  %864 = vmatpush.msrb.mxu1 %v844_v28  ;;  %v1160_v29 = vld [vmem:[%s2119_s0] ss:$0 sm:$0xff]  ;;  %898 = vmatpush.msrb.mxu2 %v878_v39 }
 0x23b   :  { %v509_v31 = vmul.f32 0.05, %v506_v30  ;;  %vm508_vm6 = vcmp.gt.f32.partialorder %v506_v30, 0.0 }
 0x23d   :  { %v510_v32 = vsel %vm508_vm6, %v506_v30, %v509_v31 }
 0x23e   :  { %1077 = vmatmul.msk.f32.vlgmr.msra.gmra.mxu3 %vm519_vm5, %v510_v32  ;;  %v843_v32 = vld [vmem:[#allocation26 + $0x10] sm:$0xff] }
 0x23f   :  { %799 = vmatpush.msra.mxu3 %v779_v4  ;;  %865 = vmatpush.msrb.mxu1 %v843_v32  ;;  %v1166_v4 = vld [vmem:[%s1892_s20] ss:$0 sm:$0xff]  ;;  %s1615_s20 = scalar_lea.hbm %s1902_s19, 8 }
 0x240   :  { %p1617_p8 = scmp.lt.s32.totalorder %s1615_s20, %s1613_s28 }
 0x241   :  { %800 = vmatpush.msra.mxu3 %v778_v12  ;;  %866 = vmatpush.msrb.mxu1 %v842_v33 }
 0x242   :  { %p1618_p9 = por %p1617_p8, %p1616_p7 }
 0x243   :  { %801 = vmatpush.msra.mxu3 %v777_v13  ;;  %867 = vmatpush.msrb.mxu1 %v841_v35 }
 0x244   :  { %p1619_p10 = pnand %p1618_p9, %p1614_p6 }
 0x245   :  { %802 = vmatpush.msra.mxu3 %v776_v14 }
 0x2bb   :  { %v643_v47 = vpop.f32.mrf.mxu2 }
 0x2bc   :  { %v644_v48 = vadd.f32 %v1154_v46, %v643_v47 }
 0x2be   :  { %vm646_vm7 = vcmp.gt.f32.partialorder %v644_v48, 0.0  ;;  %v647_v49 = vmul.f32 0.05, %v644_v48 }
 0x2c0   :  { %v648_v51 = vsel %vm646_vm7, %v644_v48, %v647_v49 }
 0x2c1   :  { %v540_v52 = vpop.f32.mrf.mxu3  ;;  %1082 = vmatmul.msk.f32.vlgmr.msrb.gmra.mxu3 %vm519_vm5, %v648_v51  ;;  %v876_v51 = vld [vmem:[%s2120_s22 + $0x8] sm:$0xff] }
 0x2c2   :  { %v541_v53 = vadd.f32 %v1155_v50, %v540_v52  ;;  %928 = vmatpush.msrb.mxu3 %v911_v15  ;;  %v877_v50 = vld [vmem:[%s2120_s22 + $0x10] sm:$0xff]  ;;  %v976_v52 = vld [vmem:[%s1887_s4 + $0x18] sm:$0xff] }
 0x2c3   :  { %899 = vmatpush.msrb.mxu2 %v877_v50 }
 0x2c4   :  { %vm543_vm8 = vcmp.gt.f32.partialorder %v541_v53, 0.0  ;;  %v544_v54 = vmul.f32 0.05, %v541_v53  ;;  %929 = vmatpush.msrb.mxu3 %v910_v17 }
 0x2c5   :  { %900 = vmatpush.msrb.mxu2 %v876_v51 }
 0x2c6   :  { %v545_v55 = vsel %vm543_vm8, %v541_v53, %v544_v54  ;;  %930 = vmatpush.msrb.mxu3 %v909_v19  ;;  %v875_v53 = vld [vmem:[%s2120_s22] sm:$0xff]  ;;  %v975_v54 = vld [vmem:[%s1887_s4 + $0x10] sm:$0xff] }
 0x2c7   :  { %1078 = vmatmul.msk.f32.vlgmr.msrb.gmra.mxu0 %vm519_vm5, %v545_v55  ;;  %901 = vmatpush.msrb.mxu2 %v875_v53  ;;  %v974_v55 = vld [vmem:[%s1887_s4 + $0x8] sm:$0xff]  ;;  %s1703_s4 = smov [#allocation31]  }
 0x2c8   :  { %830 = vmatpush.msrb.mxu0 %v810_v16  ;;  %931 = vmatpush.msrb.mxu3 %v908_v26  ;;  %s1013_s17 = sshll.u32 %s1703_s4, 4  ;;  %s1014_s17 = int_to_ptr.vmem [resolvable:$true] %s1013_s17 }
 0x2ca   :  { %831 = vmatpush.msrb.mxu0 %v809_v18 }
 0x2cc   :  { %832 = vmatpush.msrb.mxu0 %v808_v25 }
 0x2ce   :  { %833 = vmatpush.msrb.mxu0 %v807_v27 }
 0x344   :  { %v574_v60 = vpop.f32.mrf.mxu0  ;;  %v677_v61 = vpop.f32.mrf.mxu3 }
 0x345   :  { %v575_v62 = vadd.f32 %v1156_v58, %v574_v60  ;;  %v678_v63 = vadd.f32 %v1157_v59, %v677_v61  ;;  %v1164_v61 = vld [vmem:[%s2124_s8] ss:$0 sm:$0xff] }
 0x347   :  { %1083 = vmatmul.msk.f32.vlgmr.msra.gmra.mxu0 %vm519_vm5, %v678_v63  ;;  %1084 = vmatmul.msk.f32.vlgmr.msra.gmra.mxu1 %vm519_vm5, %v575_v62 }
 0x348   :  { %962 = vmatpush.msra.mxu0 %v942_v34  ;;  %996 = vmatpush.msra.mxu1 %v976_v52 }
 0x34a   :  { %963 = vmatpush.msra.mxu0 %v941_v36  ;;  %997 = vmatpush.msra.mxu1 %v975_v54 }
 0x34c   :  { %964 = vmatpush.msra.mxu0 %v940_v37  ;;  %998 = vmatpush.msra.mxu1 %v974_v55 }
 0x34e   :  { %965 = vmatpush.msra.mxu0 %v939_v38  ;;  %999 = vmatpush.msra.mxu1 %v973_v56 }
 0x3c4   :  { %v708_v6 = vpop.f32.mrf.mxu0  ;;  %v731_v7 = vpop.f32.mrf.mxu1 }
 0x3c5   :  { %v732_v8 = vadd.f32 %v731_v7, %v708_v6 }
 0x3c7   :  { %v738_v9 = vadd.f32 %v1158_v5, %v732_v8 }
 0x3c9   :  { %vm739_vm9 = vcmp.gt.f32.partialorder %v738_v9, 0.0  ;;  %v740_v10 = vmul.f32 0.05, %v738_v9 }
 0x3cb   :  { %v741_v11 = vsel %vm739_vm9, %v738_v9, %v740_v10 }
 0x3cc   :  { %1085 = vmatmul.msk.f32.vlgmr.msra.gmra.mxu2 %vm519_vm5, %v741_v11 }
 0x44f   :  { %v770_v21 = vpop.f32.mrf.mxu2 }
 0x450   :  { %v771_v22 = vadd.f32 %v1159_v20, %v770_v21 }
 0x452   :  { %vm773_vm10 = vcmp.gt.f32.partialorder %v771_v22, 0.0  ;;  %v774_v23 = vmul.f32 0.05, %v771_v22 }
 0x454   :  { %v775_v24 = vsel %vm773_vm10, %v771_v22, %v774_v23 }
 0x455   :  { %1086 = vmatmul.msk.f32.vlgmr.msra.gmra.mxu3 %vm519_vm5, %v775_v24 }
 0x4d8   :  { %v804_v30 = vpop.f32.mrf.mxu3 }
 0x4d9   :  { %v805_v31 = vadd.f32 %v1160_v29, %v804_v30 }
 0x4db   :  { %1087 = vmatmul.msk.f32.vlgmr.msrb.gmra.mxu0 %vm519_vm5, %v805_v31  ;;  %1090 = vmatmul.msk.f32.vlgmr.msrb.gmra.mxu3 %vm519_vm5, %v805_v31 }
 0x558   :  { %v835_v41 = vpop.f32.mrf.mxu0 }
 0x559   :  { %v836_v42 = vadd.f32 %v1161_v40, %v835_v41 }
 0x55b   :  { %vm838_vm11 = vcmp.gt.f32.partialorder %v836_v42, 0.0  ;;  %v839_v43 = vmul.f32 0.05, %v836_v42 }
 0x55d   :  { %v840_v45 = vsel %vm838_vm11, %v836_v42, %v839_v43 }
 0x55e   :  { %1088 = vmatmul.msk.f32.vlgmr.msrb.gmra.mxu1 %vm519_vm5, %v840_v45  ;;  %v933_v46 = vpop.f32.mrf.mxu3 }
 0x55f   :  { %v934_v47 = vadd.f32 %v1162_v44, %v933_v46 }
 0x561   :  { %vm936_vm12 = vcmp.gt.f32.partialorder %v934_v47, 0.0  ;;  %v937_v48 = vmul.f32 0.05, %v934_v47 }
 0x563   :  { %v938_v49 = vsel %vm936_vm12, %v934_v47, %v937_v48 }
 0x564   :  { %1091 = vmatmul.msk.f32.vlgmr.msra.gmra.mxu0 %vm519_vm5, %v938_v49 }
 0x5db   :  { %v869_v58 = vpop.f32.mrf.mxu1 }
 0x5dc   :  { %v870_v59 = vadd.f32 %v1163_v57, %v869_v58 }
 0x5de   :  { %vm872_vm13 = vcmp.gt.f32.partialorder %v870_v59, 0.0  ;;  %v873_v60 = vmul.f32 0.05, %v870_v59 }
 0x5e0   :  { %v874_v62 = vsel %vm872_vm13, %v870_v59, %v873_v60 }
 0x5e1   :  { %1089 = vmatmul.msk.f32.vlgmr.msrb.gmra.mxu2 %vm519_vm5, %v874_v62  ;;  %v967_v63 = vpop.f32.mrf.mxu0 }
 0x5e2   :  { %v968_v0 = vadd.f32 %v1164_v61, %v967_v63 }
 0x5e4   :  { %vm970_vm14 = vcmp.gt.f32.partialorder %v968_v0, 0.0  ;;  %v971_v1 = vmul.f32 0.05, %v968_v0 }
 0x5e6   :  { %v972_v2 = vsel %vm970_vm14, %v968_v0, %v971_v1 }
 0x5e7   :  { %1092 = vmatmul.msk.f32.vlgmr.msra.gmra.mxu1 %vm519_vm5, %v972_v2 }
 0x664   :  { %v903_v5 = vpop.f32.mrf.mxu2  ;;  %v1001_v6 = vpop.f32.mrf.mxu1 }
 0x665   :  { %v904_v7 = vadd.f32 %v1165_v3, %v903_v5  ;;  %v1002_v8 = vadd.f32 %v1166_v4, %v1001_v6 }
 0x667   :  { %907 = vst.msk [vmem:[%s1897_s6] sm:$0xff] %vm906_vm15, %v904_v7 }
 0x668   :  { %1005 = vst.msk [vmem:[#allocation31] sm:$0xff] %vm1004_vm0, %v1002_v8 }
 0x669   :  { %1622 = shalt.err (!%p1619_p10)
}
 0x66a   :  { %1018 = dma.vmem_to_hbm [thread:$0]  %s1014_s17, 128, %s1016_s18, [#allocation4]  }
 0x66b   :  { %1643 = dma.done.wait [#allocation4], 128  }
 0x66c   :  { %1644 = vsyncadd [#allocation4], 4294967168 }
 0x66d   :  { %1025 = vsyncpa [#allocation3], 1 }
 0x66e   :  { %1026 = vsyncpa [#allocation6], 1 }
 0x66f   :  { %1027 = vsyncpa [#allocation9], 1 }
 0x670   :  { %1028 = vsyncpa [#allocation12], 1 }
 0x671   :  { %1029 = vsyncpa [#allocation15], 1 }
 0x672   :  { %1030 = vsyncpa [#allocation18], 1 }
 0x673   :  { %1031 = vsyncpa [#allocation21], 1 }
 0x674   :  { %1032 = vsyncpa [#allocation24], 1 }
 0x675   :  { %1033 = vsyncpa [#allocation27], 1 }
 0x676   :  { %1034 = vsyncpa [#allocation30], 1 }
 0x677   :  { %1035 = vsyncpa [#allocation4], 1 }

</bundles_post_ra>
